<compile_context>
chip_gen: v7x
topology: tpu7x:2x2x1
jax: 0.10.0
libtpu: 0.0.40
codegen_flags: <defaults>
</compile_context>

<pallas_src>
import functools

import jax
import jax.numpy as jnp
from jax.experimental import pallas as pl
from jax.experimental.pallas import tpu as pltpu


def _round_up(x, m):
    return ((x + m - 1) // m) * m


def _choose_tile(M, tm_target):
    """Row (lane-axis) tile: large, multiple of 128, >=2 grid steps when there
    is enough work (v7x has 2 TensorCores), bounded padding waste."""
    M = max(int(M), 1)
    M128 = _round_up(M, 128)
    tm = min(_round_up(int(tm_target), 128), M128)
    # Keep at least 2 grid steps when there is enough work (megacore sharding).
    if tm >= M128 and M128 >= 256:
        tm = _round_up(-(-M128 // 2), 128)
    # Bound padding waste (jnp.pad traffic + wasted compute/writeback).
    def pad_waste(t):
        return -(-M // t) * t - M
    while tm > 128 and pad_waste(tm) > max(127, M // 8):
        tm = _round_up(tm // 2, 128)
    grid = -(-M // tm)
    return tm, grid * tm


# ---------------------------------------------------------------------------
# Fused kernel: whole MLP for one (features, rows) tile.
# refs = (params..., o_ref); params per layer are (W, b) or, when the layer's
# input carries a pending skip concat, (W_h, W_in, b) pre-split in the wrapper:
#     W @ concat([h, inp], axis=0)  ==  W_h @ h + W_in @ inp
# ---------------------------------------------------------------------------
def _fused_mlp_kernel(x_ref, *refs, num_layers, skips, has_last, mxu_precision):
    o_ref = refs[-1]
    params = refs[:-1]
    cdt = x_ref.dtype  # matmul streaming dtype (f32 or bf16)

    def matmul(w_ref, xin):
        return jnp.dot(w_ref[...], xin,
                       preferred_element_type=jnp.float32,
                       precision=mxu_precision)

    x = x_ref[...]            # (in_channels, tm), compute dtype
    inp = x                   # kept live for the skip connections
    h = None                  # f32 activation after each hidden layer
    pending = False           # True => logical activation is concat([h, inp])
    idx = 0

    def layer_input():
        # First layer consumes the streamed x; later layers cast the f32
        # activation back to the matmul dtype right before the dot.
        return x if h is None else h.astype(cdt)

    for i in range(num_layers):
        xin = layer_input()
        if pending:
            w_h, w_in, b = params[idx], params[idx + 1], params[idx + 2]
            idx += 3
            y = matmul(w_h, xin) + matmul(w_in, inp) + b[...]
        else:
            w, b = params[idx], params[idx + 1]
            idx += 2
            y = matmul(w, xin) + b[...]
        h = jnp.maximum(y, 0.0)            # ReLU on the f32 accumulator
        pending = i in skips

    if has_last:
        xin = layer_input()
        if pending:
            w_h, w_in, b = params[idx], params[idx + 1], params[idx + 2]
            out = matmul(w_h, xin) + matmul(w_in, inp) + b[...]
        else:
            w, b = params[idx], params[idx + 1]
            out = matmul(w, xin) + b[...]
    else:
        out = x.astype(jnp.float32) if h is None else h
        if pending:
            # out_channels == 0 and final layer is a skip layer: the output is
            # the concat itself (sublane-axis concat, output stays lane-dense).
            out = jnp.concatenate([out, inp.astype(jnp.float32)], axis=0)

    o_ref[...] = out.astype(o_ref.dtype)


# ---------------------------------------------------------------------------
# Wrapper (matches MLP_with_skips.forward, int out_channels path)
# ---------------------------------------------------------------------------
_WEIGHT_SINGLE_BUFFER_OK = True  # flipped off if pipeline_mode is rejected


def mlp_with_skips_forward(params, inputs, *, num_layers, skips, tm=2048,
                           compute_dtype=None):
    """params: {"net": [(W(out,in), b(out,1)), ...], "last": (W, b) or None}."""
    global _WEIGHT_SINGLE_BUFFER_OK
    skips = tuple(skips)
    lead_shape = inputs.shape[:-1]
    in_channels = inputs.shape[-1]
    out_dtype = inputs.dtype
    cdt = jnp.dtype(compute_dtype) if compute_dtype is not None else jnp.dtype(out_dtype)

    x = inputs.reshape(-1, in_channels)
    M = x.shape[0]
    has_last = params["last"] is not None
    dim_hidden = params["net"][0][0].shape[0] if num_layers > 0 else in_channels

    tm_eff, M_pad = _choose_tile(M, tm)

    # Transposed, padded, compute-dtype input slab: (in_channels, M_pad).
    x_t = jnp.pad(x, ((0, M_pad - M), (0, 0))).T.astype(cdt)

    # Flatten params; split skip-layer weights in the wrapper so the kernel
    # never slices a weight ref (no per-step VMEM relayout).
    flat_params = []

    def add_linear(w, b, pending_skip):
        w = w.astype(cdt)
        b = b.astype(jnp.float32)
        if pending_skip:
            flat_params.extend([w[:, :dim_hidden], w[:, dim_hidden:], b])
        else:
            flat_params.extend([w, b])

    pending = False
    for i, (w, b) in enumerate(params["net"]):
        add_linear(w, b, pending)
        pending = i in skips
    if has_last:
        add_linear(*params["last"], pending)

    if has_last:
        out_w = params["last"][0].shape[0]
    elif num_layers > 0:
        out_w = dim_hidden + (in_channels if (num_layers - 1) in skips else 0)
    else:
        out_w = in_channels

    # VMEM budget: resident weights (x2 safety if double-buffered) +
    # double-buffered x/out tiles + a few live f32 activation tiles.
    weight_bytes = sum(p.size * p.dtype.itemsize for p in flat_params)
    x_tile_bytes = in_channels * tm_eff * jnp.dtype(cdt).itemsize
    out_tile_bytes = out_w * tm_eff * jnp.dtype(out_dtype).itemsize
    max_width = max(in_channels, dim_hidden, out_w)
    act_bytes = 4 * max_width * tm_eff * 4
    vmem_bytes = 2 * weight_bytes + 2 * x_tile_bytes + 2 * out_tile_bytes \
        + act_bytes + (4 << 20)
    vmem_bytes = int(min(max(vmem_bytes, 32 << 20), 64 << 20))

    # Cost estimate (advisory, helps XLA schedule surrounding pad/transpose).
    mm_elems = sum(w.size for (w, _b) in params["net"])
    if has_last:
        mm_elems += params["last"][0].size
    cost = pl.CostEstimate(
        flops=2 * M_pad * mm_elems,
        transcendentals=0,
        bytes_accessed=int(x_t.size * x_t.dtype.itemsize + weight_bytes
                           + out_w * M_pad * jnp.dtype(out_dtype).itemsize))

    mxu_precision = jax.lax.Precision.HIGHEST if cdt == jnp.float32 else None
    kernel = functools.partial(
        _fused_mlp_kernel, num_layers=num_layers, skips=skips,
        has_last=has_last, mxu_precision=mxu_precision)

    def run(single_buffer_weights):
        in_specs = [pl.BlockSpec((in_channels, tm_eff), lambda i: (0, i))]
        for p in flat_params:
            if single_buffer_weights:
                # Constant block index -> no prefetch buffer needed.
                in_specs.append(pl.BlockSpec(p.shape, lambda i: (0, 0),
                                             pipeline_mode=pl.Buffered(1)))
            else:
                in_specs.append(pl.BlockSpec(p.shape, lambda i: (0, 0)))
        out_specs = pl.BlockSpec((out_w, tm_eff), lambda i: (0, i))
        return pl.pallas_call(
            kernel,
            out_shape=jax.ShapeDtypeStruct((out_w, M_pad), out_dtype),
            grid=(M_pad // tm_eff,),
            in_specs=in_specs,
            out_specs=out_specs,
            compiler_params=pltpu.CompilerParams(
                dimension_semantics=("parallel",),
                vmem_limit_bytes=vmem_bytes),
            cost_estimate=cost,
        )(x_t, *flat_params)

    if _WEIGHT_SINGLE_BUFFER_OK:
        try:
            out_t = run(True)
        except Exception:
            # pipeline_mode=pl.Buffered(1) not supported by this JAX build on
            # the pallas_call path -> fall back to default double buffering.
            _WEIGHT_SINGLE_BUFFER_OK = False
            out_t = run(False)
    else:
        out_t = run(False)

    out = out_t[:, :M].T
    return out.reshape(*lead_shape, out_w)


# ---------------------------------------------------------------------------
# Parameter init (torch nn.Linear layout: W (out, in), b (out, 1))
# ---------------------------------------------------------------------------
def init_mlp_params(key, in_channels, dim_hidden, out_channels, num_layers, skips):
    params = {"net": [], "last": None}
    c_in = in_channels
    for i in range(num_layers):
        key, kw, kb = jax.random.split(key, 3)
        bound = 1.0 / float(c_in) ** 0.5
        w = jax.random.uniform(kw, (dim_hidden, c_in), jnp.float32, -bound, bound)
        b = jax.random.uniform(kb, (dim_hidden, 1), jnp.float32, -bound, bound)
        params["net"].append((w, b))
        c_in = dim_hidden + (in_channels if i in skips else 0)
    if isinstance(out_channels, int) and out_channels > 0:
        key, kw, kb = jax.random.split(key, 3)
        bound = 1.0 / float(c_in) ** 0.5
        w = jax.random.uniform(kw, (out_channels, c_in), jnp.float32, -bound, bound)
        b = jax.random.uniform(kb, (out_channels, 1), jnp.float32, -bound, bound)
        params["last"] = (w, b)
    return params


# Pure-JAX reference (mirrors the PyTorch forward; correctness check only).
def mlp_with_skips_reference(params, inputs, *, num_layers, skips):
    lead_shape = inputs.shape[:-1]
    x = inputs.reshape(-1, inputs.shape[-1])
    inp = x
    hi = jax.lax.Precision.HIGHEST
    for i in range(num_layers):
        w, b = params["net"][i]
        x = jnp.maximum(jnp.dot(x, w.T, precision=hi) + b[:, 0], 0.0)
        if i in skips:
            x = jnp.concatenate([x, inp], axis=-1)
    if params["last"] is not None:
        w, b = params["last"]
        x = jnp.dot(x, w.T, precision=hi) + b[:, 0]
    return x.reshape(*lead_shape, x.shape[-1])


# ---------------------------------------------------------------------------
if __name__ == "__main__":
    # Module config: MLP_with_skips(in_channels=16, dim_hidden=32,
    #                               out_channels=8, num_layers=4, skips=(2,))
    in_channels, dim_hidden, out_channels = 16, 32, 8
    num_layers, skips = 4, (2,)

    key = jax.random.PRNGKey(0)
    key, pkey, k1, k2, k3 = jax.random.split(key, 5)
    params = init_mlp_params(pkey, in_channels, dim_hidden, out_channels,
                             num_layers, skips)

    # f32 path, strict check: (2, 8, 16) -> 16 rows
    x = jax.random.normal(k1, (2, 8, in_channels), dtype=jnp.float32)
    out = jax.block_until_ready(
        mlp_with_skips_forward(params, x, num_layers=num_layers, skips=skips))
    ref = mlp_with_skips_reference(params, x, num_layers=num_layers, skips=skips)
    assert out.shape == (2, 8, out_channels), out.shape
    assert jnp.allclose(out, ref, atol=2e-5, rtol=2e-5), "mismatch vs reference (f32)"

    # Ragged row count (3*5 = 15 rows): exercises the pad + slice path.
    x2 = jax.random.normal(k2, (3, 5, in_channels), dtype=jnp.float32)
    out2 = jax.block_until_ready(
        mlp_with_skips_forward(params, x2, num_layers=num_layers, skips=skips))
    ref2 = mlp_with_skips_reference(params, x2, num_layers=num_layers, skips=skips)
    assert out2.shape == (3, 5, out_channels), out2.shape
    assert jnp.allclose(out2, ref2, atol=2e-5, rtol=2e-5), "mismatch vs reference (ragged)"

    # Multi-step grid (4*80 = 320 rows -> several row tiles), f32 strict check.
    x3 = jax.random.normal(k3, (4, 80, in_channels), dtype=jnp.float32)
    out3 = jax.block_until_ready(
        mlp_with_skips_forward(params, x3, num_layers=num_layers, skips=skips))
    ref3 = mlp_with_skips_reference(params, x3, num_layers=num_layers, skips=skips)
    assert out3.shape == (4, 80, out_channels), out3.shape
    assert jnp.allclose(out3, ref3, atol=2e-5, rtol=2e-5), "mismatch vs reference (multi-tile)"

    # bf16 streaming path (f32 accumulation), loose tolerance.
    out3_bf16 = jax.block_until_ready(
        mlp_with_skips_forward(params, x3, num_layers=num_layers, skips=skips,
                               compute_dtype=jnp.bfloat16))
    assert out3_bf16.shape == (4, 80, out_channels), out3_bf16.shape
    assert jnp.allclose(out3_bf16, ref3, atol=7e-2, rtol=7e-2), "mismatch vs reference (bf16)"

    print("KERNEL_OK")
</pallas_src>

<mosaic_0001>
module attributes {stable_mosaic.version = 11 : i64} {
  func.func @_fused_mlp_kernel(%arg0: i32, %arg1: memref<16x128xf32, #tpu.memory_space<vmem>>, %arg2: memref<32x16xf32, #tpu.memory_space<vmem>>, %arg3: memref<32x1xf32, #tpu.memory_space<vmem>>, %arg4: memref<32x32xf32, #tpu.memory_space<vmem>>, %arg5: memref<32x1xf32, #tpu.memory_space<vmem>>, %arg6: memref<32x32xf32, #tpu.memory_space<vmem>>, %arg7: memref<32x1xf32, #tpu.memory_space<vmem>>, %arg8: memref<32x32xf32, #tpu.memory_space<vmem>>, %arg9: memref<32x16xf32, #tpu.memory_space<vmem>>, %arg10: memref<32x1xf32, #tpu.memory_space<vmem>>, %arg11: memref<8x32xf32, #tpu.memory_space<vmem>>, %arg12: memref<8x1xf32, #tpu.memory_space<vmem>>, %arg13: memref<8x128xf32, #tpu.memory_space<vmem>>) attributes {dimension_semantics = [#tpu.dimension_semantics<parallel>], iteration_bounds = array<i64: 1>, scalar_prefetch = 0 : i64, scratch_operands = 0 : i64, tpu.core_type = #tpu.core_type<tc>, window_params = [{transform_indices = @transform_0, window_bounds = array<i64: 16, 128>}, {pipeline_mode = #tpu.pipeline_mode<synchronous>, transform_indices = @transform_1, window_bounds = array<i64: 32, 16>}, {pipeline_mode = #tpu.pipeline_mode<synchronous>, transform_indices = @transform_2, window_bounds = array<i64: 32, 1>}, {pipeline_mode = #tpu.pipeline_mode<synchronous>, transform_indices = @transform_3, window_bounds = array<i64: 32, 32>}, {pipeline_mode = #tpu.pipeline_mode<synchronous>, transform_indices = @transform_4, window_bounds = array<i64: 32, 1>}, {pipeline_mode = #tpu.pipeline_mode<synchronous>, transform_indices = @transform_5, window_bounds = array<i64: 32, 32>}, {pipeline_mode = #tpu.pipeline_mode<synchronous>, transform_indices = @transform_6, window_bounds = array<i64: 32, 1>}, {pipeline_mode = #tpu.pipeline_mode<synchronous>, transform_indices = @transform_7, window_bounds = array<i64: 32, 32>}, {pipeline_mode = #tpu.pipeline_mode<synchronous>, transform_indices = @transform_8, window_bounds = array<i64: 32, 16>}, {pipeline_mode = #tpu.pipeline_mode<synchronous>, transform_indices = @transform_9, window_bounds = array<i64: 32, 1>}, {pipeline_mode = #tpu.pipeline_mode<synchronous>, transform_indices = @transform_10, window_bounds = array<i64: 8, 32>}, {pipeline_mode = #tpu.pipeline_mode<synchronous>, transform_indices = @transform_11, window_bounds = array<i64: 8, 1>}, {transform_indices = @transform_12, window_bounds = array<i64: 8, 128>}]} {
    %c0 = arith.constant 0 : index
    %c0_0 = arith.constant 0 : index
    %0 = vector.load %arg1[%c0, %c0_0] : memref<16x128xf32, #tpu.memory_space<vmem>>, vector<16x128xf32>
    %c0_1 = arith.constant 0 : index
    %c0_2 = arith.constant 0 : index
    %1 = vector.load %arg2[%c0_1, %c0_2] : memref<32x16xf32, #tpu.memory_space<vmem>>, vector<32x16xf32>
    %cst = arith.constant dense<0.000000e+00> : vector<32x128xf32>
    %2 = tpu.matmul %1, %0, %cst {dimension_numbers = #tpu.dot_dimension_numbers<[1], [0], [0], [1], [0, 0, 1, 1], [], []>, precision = #tpu.contract_precision<fp32>} : vector<32x16xf32>, vector<16x128xf32>, vector<32x128xf32> -> vector<32x128xf32>
    %c0_3 = arith.constant 0 : index
    %c0_4 = arith.constant 0 : index
    %3 = vector.load %arg3[%c0_3, %c0_4] : memref<32x1xf32, #tpu.memory_space<vmem>>, vector<32x1xf32>
    %4 = vector.broadcast %3 : vector<32x1xf32> to vector<32x128xf32>
    %5 = arith.addf %2, %4 : vector<32x128xf32>
    %cst_5 = arith.constant 0.000000e+00 : f32
    %6 = vector.broadcast %cst_5 : f32 to vector<32x128xf32>
    %7 = arith.maximumf %5, %6 : vector<32x128xf32>
    %c0_6 = arith.constant 0 : index
    %c0_7 = arith.constant 0 : index
    %8 = vector.load %arg4[%c0_6, %c0_7] : memref<32x32xf32, #tpu.memory_space<vmem>>, vector<32x32xf32>
    %cst_8 = arith.constant dense<0.000000e+00> : vector<32x128xf32>
    %9 = tpu.matmul %8, %7, %cst_8 {dimension_numbers = #tpu.dot_dimension_numbers<[1], [0], [0], [1], [0, 0, 1, 1], [], []>, precision = #tpu.contract_precision<fp32>} : vector<32x32xf32>, vector<32x128xf32>, vector<32x128xf32> -> vector<32x128xf32>
    %c0_9 = arith.constant 0 : index
    %c0_10 = arith.constant 0 : index
    %10 = vector.load %arg5[%c0_9, %c0_10] : memref<32x1xf32, #tpu.memory_space<vmem>>, vector<32x1xf32>
    %11 = vector.broadcast %10 : vector<32x1xf32> to vector<32x128xf32>
    %12 = arith.addf %9, %11 : vector<32x128xf32>
    %cst_11 = arith.constant 0.000000e+00 : f32
    %13 = vector.broadcast %cst_11 : f32 to vector<32x128xf32>
    %14 = arith.maximumf %12, %13 : vector<32x128xf32>
    %c0_12 = arith.constant 0 : index
    %c0_13 = arith.constant 0 : index
    %15 = vector.load %arg6[%c0_12, %c0_13] : memref<32x32xf32, #tpu.memory_space<vmem>>, vector<32x32xf32>
    %cst_14 = arith.constant dense<0.000000e+00> : vector<32x128xf32>
    %16 = tpu.matmul %15, %14, %cst_14 {dimension_numbers = #tpu.dot_dimension_numbers<[1], [0], [0], [1], [0, 0, 1, 1], [], []>, precision = #tpu.contract_precision<fp32>} : vector<32x32xf32>, vector<32x128xf32>, vector<32x128xf32> -> vector<32x128xf32>
    %c0_15 = arith.constant 0 : index
    %c0_16 = arith.constant 0 : index
    %17 = vector.load %arg7[%c0_15, %c0_16] : memref<32x1xf32, #tpu.memory_space<vmem>>, vector<32x1xf32>
    %18 = vector.broadcast %17 : vector<32x1xf32> to vector<32x128xf32>
    %19 = arith.addf %16, %18 : vector<32x128xf32>
    %cst_17 = arith.constant 0.000000e+00 : f32
    %20 = vector.broadcast %cst_17 : f32 to vector<32x128xf32>
    %21 = arith.maximumf %19, %20 : vector<32x128xf32>
    %c0_18 = arith.constant 0 : index
    %c0_19 = arith.constant 0 : index
    %22 = vector.load %arg8[%c0_18, %c0_19] : memref<32x32xf32, #tpu.memory_space<vmem>>, vector<32x32xf32>
    %cst_20 = arith.constant dense<0.000000e+00> : vector<32x128xf32>
    %23 = tpu.matmul %22, %21, %cst_20 {dimension_numbers = #tpu.dot_dimension_numbers<[1], [0], [0], [1], [0, 0, 1, 1], [], []>, precision = #tpu.contract_precision<fp32>} : vector<32x32xf32>, vector<32x128xf32>, vector<32x128xf32> -> vector<32x128xf32>
    %c0_21 = arith.constant 0 : index
    %c0_22 = arith.constant 0 : index
    %24 = vector.load %arg9[%c0_21, %c0_22] : memref<32x16xf32, #tpu.memory_space<vmem>>, vector<32x16xf32>
    %cst_23 = arith.constant dense<0.000000e+00> : vector<32x128xf32>
    %25 = tpu.matmul %24, %0, %cst_23 {dimension_numbers = #tpu.dot_dimension_numbers<[1], [0], [0], [1], [0, 0, 1, 1], [], []>, precision = #tpu.contract_precision<fp32>} : vector<32x16xf32>, vector<16x128xf32>, vector<32x128xf32> -> vector<32x128xf32>
    %26 = arith.addf %23, %25 : vector<32x128xf32>
    %c0_24 = arith.constant 0 : index
    %c0_25 = arith.constant 0 : index
    %27 = vector.load %arg10[%c0_24, %c0_25] : memref<32x1xf32, #tpu.memory_space<vmem>>, vector<32x1xf32>
    %28 = vector.broadcast %27 : vector<32x1xf32> to vector<32x128xf32>
    %29 = arith.addf %26, %28 : vector<32x128xf32>
    %cst_26 = arith.constant 0.000000e+00 : f32
    %30 = vector.broadcast %cst_26 : f32 to vector<32x128xf32>
    %31 = arith.maximumf %29, %30 : vector<32x128xf32>
    %c0_27 = arith.constant 0 : index
    %c0_28 = arith.constant 0 : index
    %32 = vector.load %arg11[%c0_27, %c0_28] : memref<8x32xf32, #tpu.memory_space<vmem>>, vector<8x32xf32>
    %cst_29 = arith.constant dense<0.000000e+00> : vector<8x128xf32>
    %33 = tpu.matmul %32, %31, %cst_29 {dimension_numbers = #tpu.dot_dimension_numbers<[1], [0], [0], [1], [0, 0, 1, 1], [], []>, precision = #tpu.contract_precision<fp32>} : vector<8x32xf32>, vector<32x128xf32>, vector<8x128xf32> -> vector<8x128xf32>
    %c0_30 = arith.constant 0 : index
    %c0_31 = arith.constant 0 : index
    %34 = vector.load %arg12[%c0_30, %c0_31] : memref<8x1xf32, #tpu.memory_space<vmem>>, vector<8x1xf32>
    %35 = vector.broadcast %34 : vector<8x1xf32> to vector<8x128xf32>
    %36 = arith.addf %33, %35 : vector<8x128xf32>
    %c0_32 = arith.constant 0 : index
    %c0_33 = arith.constant 0 : index
    %37 = vector.load %arg13[%c0_32, %c0_33] : memref<8x128xf32, #tpu.memory_space<vmem>>, vector<8x128xf32>
    tpu.vector_store %arg13[%c0_32, %c0_33], %36 {strides = array<i32>} : memref<8x128xf32, #tpu.memory_space<vmem>>, vector<8x128xf32>,
    return
  }
  func.func @transform_0(%arg0: i32) -> (i32, i32) {
    %c0_i32 = arith.constant 0 : i32
    %c0_i32_0 = arith.constant 0 : i32
    return %c0_i32, %arg0 : i32, i32
  }
  func.func @transform_1(%arg0: i32) -> (i32, i32) {
    %c0_i32 = arith.constant 0 : i32
    %c0_i32_0 = arith.constant 0 : i32
    %c0_i32_1 = arith.constant 0 : i32
    return %c0_i32, %c0_i32_0 : i32, i32
  }
  func.func @transform_2(%arg0: i32) -> (i32, i32) {
    %c0_i32 = arith.constant 0 : i32
    %c0_i32_0 = arith.constant 0 : i32
    %c0_i32_1 = arith.constant 0 : i32
    return %c0_i32, %c0_i32_0 : i32, i32
  }
  func.func @transform_3(%arg0: i32) -> (i32, i32) {
    %c0_i32 = arith.constant 0 : i32
    %c0_i32_0 = arith.constant 0 : i32
    %c0_i32_1 = arith.constant 0 : i32
    return %c0_i32, %c0_i32_0 : i32, i32
  }
  func.func @transform_4(%arg0: i32) -> (i32, i32) {
    %c0_i32 = arith.constant 0 : i32
    %c0_i32_0 = arith.constant 0 : i32
    %c0_i32_1 = arith.constant 0 : i32
    return %c0_i32, %c0_i32_0 : i32, i32
  }
  func.func @transform_5(%arg0: i32) -> (i32, i32) {
    %c0_i32 = arith.constant 0 : i32
    %c0_i32_0 = arith.constant 0 : i32
    %c0_i32_1 = arith.constant 0 : i32
    return %c0_i32, %c0_i32_0 : i32, i32
  }
  func.func @transform_6(%arg0: i32) -> (i32, i32) {
    %c0_i32 = arith.constant 0 : i32
    %c0_i32_0 = arith.constant 0 : i32
    %c0_i32_1 = arith.constant 0 : i32
    return %c0_i32, %c0_i32_0 : i32, i32
  }
  func.func @transform_7(%arg0: i32) -> (i32, i32) {
    %c0_i32 = arith.constant 0 : i32
    %c0_i32_0 = arith.constant 0 : i32
    %c0_i32_1 = arith.constant 0 : i32
    return %c0_i32, %c0_i32_0 : i32, i32
  }
  func.func @transform_8(%arg0: i32) -> (i32, i32) {
    %c0_i32 = arith.constant 0 : i32
    %c0_i32_0 = arith.constant 0 : i32
    %c0_i32_1 = arith.constant 0 : i32
    return %c0_i32, %c0_i32_0 : i32, i32
  }
  func.func @transform_9(%arg0: i32) -> (i32, i32) {
    %c0_i32 = arith.constant 0 : i32
    %c0_i32_0 = arith.constant 0 : i32
    %c0_i32_1 = arith.constant 0 : i32
    return %c0_i32, %c0_i32_0 : i32, i32
  }
  func.func @transform_10(%arg0: i32) -> (i32, i32) {
    %c0_i32 = arith.constant 0 : i32
    %c0_i32_0 = arith.constant 0 : i32
    %c0_i32_1 = arith.constant 0 : i32
    return %c0_i32, %c0_i32_0 : i32, i32
  }
  func.func @transform_11(%arg0: i32) -> (i32, i32) {
    %c0_i32 = arith.constant 0 : i32
    %c0_i32_0 = arith.constant 0 : i32
    %c0_i32_1 = arith.constant 0 : i32
    return %c0_i32, %c0_i32_0 : i32, i32
  }
  func.func @transform_12(%arg0: i32) -> (i32, i32) {
    %c0_i32 = arith.constant 0 : i32
    %c0_i32_0 = arith.constant 0 : i32
    return %c0_i32, %arg0 : i32, i32
  }
}

module attributes {stable_mosaic.version = 11 : i64} {
  func.func @_fused_mlp_kernel(%arg0: i32, %arg1: memref<16x128xf32, #tpu.memory_space<vmem>>, %arg2: memref<32x16xf32, #tpu.memory_space<vmem>>, %arg3: memref<32x1xf32, #tpu.memory_space<vmem>>, %arg4: memref<32x32xf32, #tpu.memory_space<vmem>>, %arg5: memref<32x1xf32, #tpu.memory_space<vmem>>, %arg6: memref<32x32xf32, #tpu.memory_space<vmem>>, %arg7: memref<32x1xf32, #tpu.memory_space<vmem>>, %arg8: memref<32x32xf32, #tpu.memory_space<vmem>>, %arg9: memref<32x16xf32, #tpu.memory_space<vmem>>, %arg10: memref<32x1xf32, #tpu.memory_space<vmem>>, %arg11: memref<8x32xf32, #tpu.memory_space<vmem>>, %arg12: memref<8x1xf32, #tpu.memory_space<vmem>>, %arg13: memref<8x128xf32, #tpu.memory_space<vmem>>) attributes {dimension_semantics = [#tpu.dimension_semantics<parallel>], iteration_bounds = array<i64: 1>, scalar_prefetch = 0 : i64, scratch_operands = 0 : i64, tpu.core_type = #tpu.core_type<tc>, window_params = [{transform_indices = @transform_0, window_bounds = array<i64: 16, 128>}, {pipeline_mode = #tpu.pipeline_mode<synchronous>, transform_indices = @transform_1, window_bounds = array<i64: 32, 16>}, {pipeline_mode = #tpu.pipeline_mode<synchronous>, transform_indices = @transform_2, window_bounds = array<i64: 32, 1>}, {pipeline_mode = #tpu.pipeline_mode<synchronous>, transform_indices = @transform_3, window_bounds = array<i64: 32, 32>}, {pipeline_mode = #tpu.pipeline_mode<synchronous>, transform_indices = @transform_4, window_bounds = array<i64: 32, 1>}, {pipeline_mode = #tpu.pipeline_mode<synchronous>, transform_indices = @transform_5, window_bounds = array<i64: 32, 32>}, {pipeline_mode = #tpu.pipeline_mode<synchronous>, transform_indices = @transform_6, window_bounds = array<i64: 32, 1>}, {pipeline_mode = #tpu.pipeline_mode<synchronous>, transform_indices = @transform_7, window_bounds = array<i64: 32, 32>}, {pipeline_mode = #tpu.pipeline_mode<synchronous>, transform_indices = @transform_8, window_bounds = array<i64: 32, 16>}, {pipeline_mode = #tpu.pipeline_mode<synchronous>, transform_indices = @transform_9, window_bounds = array<i64: 32, 1>}, {pipeline_mode = #tpu.pipeline_mode<synchronous>, transform_indices = @transform_10, window_bounds = array<i64: 8, 32>}, {pipeline_mode = #tpu.pipeline_mode<synchronous>, transform_indices = @transform_11, window_bounds = array<i64: 8, 1>}, {transform_indices = @transform_12, window_bounds = array<i64: 8, 128>}]} {
    %c0 = arith.constant 0 : index
    %c0_0 = arith.constant 0 : index
    %0 = vector.load %arg1[%c0, %c0_0] : memref<16x128xf32, #tpu.memory_space<vmem>>, vector<16x128xf32>
    %c0_1 = arith.constant 0 : index
    %c0_2 = arith.constant 0 : index
    %1 = vector.load %arg2[%c0_1, %c0_2] : memref<32x16xf32, #tpu.memory_space<vmem>>, vector<32x16xf32>
    %cst = arith.constant dense<0.000000e+00> : vector<32x128xf32>
    %2 = tpu.matmul %1, %0, %cst {dimension_numbers = #tpu.dot_dimension_numbers<[1], [0], [0], [1], [0, 0, 1, 1], [], []>, precision = #tpu.contract_precision<fp32>} : vector<32x16xf32>, vector<16x128xf32>, vector<32x128xf32> -> vector<32x128xf32>
    %c0_3 = arith.constant 0 : index
    %c0_4 = arith.constant 0 : index
    %3 = vector.load %arg3[%c0_3, %c0_4] : memref<32x1xf32, #tpu.memory_space<vmem>>, vector<32x1xf32>
    %4 = vector.broadcast %3 : vector<32x1xf32> to vector<32x128xf32>
    %5 = arith.addf %2, %4 : vector<32x128xf32>
    %cst_5 = arith.constant 0.000000e+00 : f32
    %6 = vector.broadcast %cst_5 : f32 to vector<32x128xf32>
    %7 = arith.maximumf %5, %6 : vector<32x128xf32>
    %c0_6 = arith.constant 0 : index
    %c0_7 = arith.constant 0 : index
    %8 = vector.load %arg4[%c0_6, %c0_7] : memref<32x32xf32, #tpu.memory_space<vmem>>, vector<32x32xf32>
    %cst_8 = arith.constant dense<0.000000e+00> : vector<32x128xf32>
    %9 = tpu.matmul %8, %7, %cst_8 {dimension_numbers = #tpu.dot_dimension_numbers<[1], [0], [0], [1], [0, 0, 1, 1], [], []>, precision = #tpu.contract_precision<fp32>} : vector<32x32xf32>, vector<32x128xf32>, vector<32x128xf32> -> vector<32x128xf32>
    %c0_9 = arith.constant 0 : index
    %c0_10 = arith.constant 0 : index
    %10 = vector.load %arg5[%c0_9, %c0_10] : memref<32x1xf32, #tpu.memory_space<vmem>>, vector<32x1xf32>
    %11 = vector.broadcast %10 : vector<32x1xf32> to vector<32x128xf32>
    %12 = arith.addf %9, %11 : vector<32x128xf32>
    %cst_11 = arith.constant 0.000000e+00 : f32
    %13 = vector.broadcast %cst_11 : f32 to vector<32x128xf32>
    %14 = arith.maximumf %12, %13 : vector<32x128xf32>
    %c0_12 = arith.constant 0 : index
    %c0_13 = arith.constant 0 : index
    %15 = vector.load %arg6[%c0_12, %c0_13] : memref<32x32xf32, #tpu.memory_space<vmem>>, vector<32x32xf32>
    %cst_14 = arith.constant dense<0.000000e+00> : vector<32x128xf32>
    %16 = tpu.matmul %15, %14, %cst_14 {dimension_numbers = #tpu.dot_dimension_numbers<[1], [0], [0], [1], [0, 0, 1, 1], [], []>, precision = #tpu.contract_precision<fp32>} : vector<32x32xf32>, vector<32x128xf32>, vector<32x128xf32> -> vector<32x128xf32>
    %c0_15 = arith.constant 0 : index
    %c0_16 = arith.constant 0 : index
    %17 = vector.load %arg7[%c0_15, %c0_16] : memref<32x1xf32, #tpu.memory_space<vmem>>, vector<32x1xf32>
    %18 = vector.broadcast %17 : vector<32x1xf32> to vector<32x128xf32>
    %19 = arith.addf %16, %18 : vector<32x128xf32>
    %cst_17 = arith.constant 0.000000e+00 : f32
    %20 = vector.broadcast %cst_17 : f32 to vector<32x128xf32>
    %21 = arith.maximumf %19, %20 : vector<32x128xf32>
    %c0_18 = arith.constant 0 : index
    %c0_19 = arith.constant 0 : index
    %22 = vector.load %arg8[%c0_18, %c0_19] : memref<32x32xf32, #tpu.memory_space<vmem>>, vector<32x32xf32>
    %cst_20 = arith.constant dense<0.000000e+00> : vector<32x128xf32>
    %23 = tpu.matmul %22, %21, %cst_20 {dimension_numbers = #tpu.dot_dimension_numbers<[1], [0], [0], [1], [0, 0, 1, 1], [], []>, precision = #tpu.contract_precision<fp32>} : vector<32x32xf32>, vector<32x128xf32>, vector<32x128xf32> -> vector<32x128xf32>
    %c0_21 = arith.constant 0 : index
    %c0_22 = arith.constant 0 : index
    %24 = vector.load %arg9[%c0_21, %c0_22] : memref<32x16xf32, #tpu.memory_space<vmem>>, vector<32x16xf32>
    %cst_23 = arith.constant dense<0.000000e+00> : vector<32x128xf32>
    %25 = tpu.matmul %24, %0, %cst_23 {dimension_numbers = #tpu.dot_dimension_numbers<[1], [0], [0], [1], [0, 0, 1, 1], [], []>, precision = #tpu.contract_precision<fp32>} : vector<32x16xf32>, vector<16x128xf32>, vector<32x128xf32> -> vector<32x128xf32>
    %26 = arith.addf %23, %25 : vector<32x128xf32>
    %c0_24 = arith.constant 0 : index
    %c0_25 = arith.constant 0 : index
    %27 = vector.load %arg10[%c0_24, %c0_25] : memref<32x1xf32, #tpu.memory_space<vmem>>, vector<32x1xf32>
    %28 = vector.broadcast %27 : vector<32x1xf32> to vector<32x128xf32>
    %29 = arith.addf %26, %28 : vector<32x128xf32>
    %cst_26 = arith.constant 0.000000e+00 : f32
    %30 = vector.broadcast %cst_26 : f32 to vector<32x128xf32>
    %31 = arith.maximumf %29, %30 : vector<32x128xf32>
    %c0_27 = arith.constant 0 : index
    %c0_28 = arith.constant 0 : index
    %32 = vector.load %arg11[%c0_27, %c0_28] : memref<8x32xf32, #tpu.memory_space<vmem>>, vector<8x32xf32>
    %cst_29 = arith.constant dense<0.000000e+00> : vector<8x128xf32>
    %33 = tpu.matmul %32, %31, %cst_29 {dimension_numbers = #tpu.dot_dimension_numbers<[1], [0], [0], [1], [0, 0, 1, 1], [], []>, precision = #tpu.contract_precision<fp32>} : vector<8x32xf32>, vector<32x128xf32>, vector<8x128xf32> -> vector<8x128xf32>
    %c0_30 = arith.constant 0 : index
    %c0_31 = arith.constant 0 : index
    %34 = vector.load %arg12[%c0_30, %c0_31] : memref<8x1xf32, #tpu.memory_space<vmem>>, vector<8x1xf32>
    %35 = vector.broadcast %34 : vector<8x1xf32> to vector<8x128xf32>
    %36 = arith.addf %33, %35 : vector<8x128xf32>
    %c0_32 = arith.constant 0 : index
    %c0_33 = arith.constant 0 : index
    %37 = vector.load %arg13[%c0_32, %c0_33] : memref<8x128xf32, #tpu.memory_space<vmem>>, vector<8x128xf32>
    tpu.vector_store %arg13[%c0_32, %c0_33], %36 {strides = array<i32>} : memref<8x128xf32, #tpu.memory_space<vmem>>, vector<8x128xf32>,
    return
  }
  func.func @transform_0(%arg0: i32) -> (i32, i32) {
    %c0_i32 = arith.constant 0 : i32
    %c0_i32_0 = arith.constant 0 : i32
    return %c0_i32, %arg0 : i32, i32
  }
  func.func @transform_1(%arg0: i32) -> (i32, i32) {
    %c0_i32 = arith.constant 0 : i32
    %c0_i32_0 = arith.constant 0 : i32
    %c0_i32_1 = arith.constant 0 : i32
    return %c0_i32, %c0_i32_0 : i32, i32
  }
  func.func @transform_2(%arg0: i32) -> (i32, i32) {
    %c0_i32 = arith.constant 0 : i32
    %c0_i32_0 = arith.constant 0 : i32
    %c0_i32_1 = arith.constant 0 : i32
    return %c0_i32, %c0_i32_0 : i32, i32
  }
  func.func @transform_3(%arg0: i32) -> (i32, i32) {
    %c0_i32 = arith.constant 0 : i32
    %c0_i32_0 = arith.constant 0 : i32
    %c0_i32_1 = arith.constant 0 : i32
    return %c0_i32, %c0_i32_0 : i32, i32
  }
  func.func @transform_4(%arg0: i32) -> (i32, i32) {
    %c0_i32 = arith.constant 0 : i32
    %c0_i32_0 = arith.constant 0 : i32
    %c0_i32_1 = arith.constant 0 : i32
    return %c0_i32, %c0_i32_0 : i32, i32
  }
  func.func @transform_5(%arg0: i32) -> (i32, i32) {
    %c0_i32 = arith.constant 0 : i32
    %c0_i32_0 = arith.constant 0 : i32
    %c0_i32_1 = arith.constant 0 : i32
    return %c0_i32, %c0_i32_0 : i32, i32
  }
  func.func @transform_6(%arg0: i32) -> (i32, i32) {
    %c0_i32 = arith.constant 0 : i32
    %c0_i32_0 = arith.constant 0 : i32
    %c0_i32_1 = arith.constant 0 : i32
    return %c0_i32, %c0_i32_0 : i32, i32
  }
  func.func @transform_7(%arg0: i32) -> (i32, i32) {
    %c0_i32 = arith.constant 0 : i32
    %c0_i32_0 = arith.constant 0 : i32
    %c0_i32_1 = arith.constant 0 : i32
    return %c0_i32, %c0_i32_0 : i32, i32
  }
  func.func @transform_8(%arg0: i32) -> (i32, i32) {
    %c0_i32 = arith.constant 0 : i32
    %c0_i32_0 = arith.constant 0 : i32
    %c0_i32_1 = arith.constant 0 : i32
    return %c0_i32, %c0_i32_0 : i32, i32
  }
  func.func @transform_9(%arg0: i32) -> (i32, i32) {
    %c0_i32 = arith.constant 0 : i32
    %c0_i32_0 = arith.constant 0 : i32
    %c0_i32_1 = arith.constant 0 : i32
    return %c0_i32, %c0_i32_0 : i32, i32
  }
  func.func @transform_10(%arg0: i32) -> (i32, i32) {
    %c0_i32 = arith.constant 0 : i32
    %c0_i32_0 = arith.constant 0 : i32
    %c0_i32_1 = arith.constant 0 : i32
    return %c0_i32, %c0_i32_0 : i32, i32
  }
  func.func @transform_11(%arg0: i32) -> (i32, i32) {
    %c0_i32 = arith.constant 0 : i32
    %c0_i32_0 = arith.constant 0 : i32
    %c0_i32_1 = arith.constant 0 : i32
    return %c0_i32, %c0_i32_0 : i32, i32
  }
  func.func @transform_12(%arg0: i32) -> (i32, i32) {
    %c0_i32 = arith.constant 0 : i32
    %c0_i32_0 = arith.constant 0 : i32
    return %c0_i32, %arg0 : i32, i32
  }
}

</mosaic_0001>

<bundles_post_ra>
// kernel: tpu_custom_call.1
= control target key start
LH: loop header
LB: loop body
LE: loop exit
PB: predicated region body
PF: predicated region fallthrough
CT: control target
= control target key end

     0   :  { %vm72_vm0 = vcmask 130048   ;;  %v4840_v9 = vmov 0   ;;  %s5392_s0 = inlined_call_operand.vmem [shape: f32[16,128], index: 0, kind: input, shape index: {}]   ;;  %s5393_s1 = inlined_call_operand.vmem [shape: f32[32,16], index: 1, kind: input, shape index: {}]   ;;  %s5394_s2 = inlined_call_operand.vmem [shape: f32[32,1], index: 2, kind: input, shape index: {}]   ;;  %s5395_s3 = inlined_call_operand.vmem [shape: f32[32,32], index: 3, kind: input, shape index: {}]   ;;  %s5396_s4 = inlined_call_operand.vmem [shape: f32[32,1], index: 4, kind: input, shape index: {}]   ;;  %s5397_s5 = inlined_call_operand.vmem [shape: f32[32,32], index: 5, kind: input, shape index: {}]   ;;  %s5398_s6 = inlined_call_operand.vmem [shape: f32[32,1], index: 6, kind: input, shape index: {}]   ;;  %s5399_s7 = inlined_call_operand.vmem [shape: f32[32,32], index: 7, kind: input, shape index: {}]   ;;  %s5400_s8 = inlined_call_operand.vmem [shape: f32[32,16], index: 8, kind: input, shape index: {}]   ;;  %s5401_s9 = inlined_call_operand.vmem [shape: f32[32,1], index: 9, kind: input, shape index: {}]   ;;  %s5402_s10 = inlined_call_operand.vmem [shape: f32[8,32], index: 10, kind: input, shape index: {}]   ;;  %s5403_s11 = inlined_call_operand.vmem [shape: f32[8,1], index: 11, kind: input, shape index: {}]   ;;  %s5404_s12 = inlined_call_operand.hbm [shape: f32[8,128], index: 12, kind: output, shape index: {}]  }
   0x1   :  { %v42_v0 = vld [vmem:[%s5392_s0] sm:$0xff]  ;;  %v43_v1 = vld [vmem:[%s5392_s0 + $0x8] sm:$0xff]  ;;  %v46_v7 = vld [vmem:[%s5393_s1 + $0x10] sm:$0xff]  ;;  %4814 = vset.pattern.permute.xlu0 %v4840_v9  ;;  %4815 = vset.pattern.permute.xlu1 %v4840_v9 }
   0x2   :  { %v44_v2 = vld [vmem:[%s5393_s1] sm:$0xff]  ;;  %v86_v3 = vand.u32 4294901760, %v42_v0  ;;  %v89_v4 = vand.u32 4294901760, %v43_v1  ;;  %v45_v6 = vld [vmem:[%s5393_s1 + $0x8] sm:$0xff]  ;;  %v47_v8 = vld [vmem:[%s5393_s1 + $0x18] sm:$0xff]  ;;  %v80_v12 = vsel %vm72_vm0, %v46_v7, 0 }
   0x3   :  { %v74_v5 = vsel %vm72_vm0, %v44_v2, 0  ;;  %v77_v11 = vsel %vm72_vm0, %v45_v6, 0  ;;  %v83_v13 = vsel %vm72_vm0, %v47_v8, 0  ;;  %v48_v14 = vld [vmem:[%s5394_s2] sm:$0xff]  ;;  %v50_v19 = vld [vmem:[%s5394_s2 + $0x10] sm:$0xff]  ;;  %v4951_v21 = vand.u32 4294901760, %v80_v12 }
   0x4   :  { %v4929_v10 = vand.u32 4294901760, %v74_v5  ;;  %v4937_v15 = vpack.c.bf16 %v89_v4, %v86_v3  ;;  %v4939_v16 = vand.u32 4294901760, %v77_v11  ;;  %v4941_v17 = vsub.f32 %v42_v0, %v86_v3  ;;  %54 = vperm.xlu0 %4814, %v48_v14   ;;  %v49_v23 = vld [vmem:[%s5394_s2 + $0x8] sm:$0xff]  ;;  %64 = vperm.xlu1 %4815, %v50_v19   ;;  %v51_v27 = vld [vmem:[%s5394_s2 + $0x18] sm:$0xff]  ;;  %v681_v37 = vld [vmem:[%s5396_s4] sm:$0xff] }
   0x5   :  { %v4943_v18 = vsub.f32 %v43_v1, %v89_v4  ;;  %v4953_v22 = vand.u32 4294901760, %v83_v13  ;;  %v4970_v29 = vsub.f32 %v80_v12, %v4951_v21 }
   0x6   :  { %v4949_v20 = vsub.f32 %v74_v5, %v4929_v10  ;;  %4455 = vmatprep.subr.bf16.mxu0 %v4937_v15  ;;  %v4960_v24 = vsub.f32 %v77_v11, %v4939_v16  ;;  %v195_v25 = vand.u32 4294901760, %v4941_v17 }
   0x7   :  { %v202_v26 = vand.u32 4294901760, %v4943_v18  ;;  %4457 = vmatpush3.bf16.msra.mxu0 %v4937_v15  ;;  %v4973_v30 = vsub.f32 %v83_v13, %v4953_v22  ;;  %v174_v35 = vand.u32 4294901760, %v4970_v29 }
   0x8   :  { %v154_v28 = vand.u32 4294901760, %v4949_v20  ;;  %v164_v31 = vand.u32 4294901760, %v4960_v24  ;;  %v196_v32 = vsub.f32 %v4941_v17, %v195_v25  ;;  %59 = vperm.xlu0 %4814, %v49_v23   ;;  %69 = vperm.xlu1 %4815, %v51_v27  }
   0x9   :  { %v203_v33 = vsub.f32 %v4943_v18, %v202_v26  ;;  %v184_v36 = vand.u32 4294901760, %v4973_v30 }
   0xa   :  { %v155_v34 = vsub.f32 %v4949_v20, %v154_v28 }
   0xb   :  { %17 = vsyncpa [#allocation3], 0  ;;  %v165_v38 = vsub.f32 %v4960_v24, %v164_v31  ;;  %v197_v39 = vand.u32 4294901760, %v196_v32  ;;  %v204_v40 = vand.u32 4294901760, %v203_v33  ;;  %v682_v41 = vld [vmem:[%s5396_s4 + $0x8] sm:$0xff]  ;;  %v175_v43 = vsub.f32 %v4970_v29, %v174_v35  ;;  %v683_v49 = vld [vmem:[%s5396_s4 + $0x10] sm:$0xff] }
   0xc   :  { %v156_v42 = vand.u32 4294901760, %v155_v34  ;;  %v185_v44 = vsub.f32 %v4973_v30, %v184_v36  ;;  %v5002_v47 = vpack.c.bf16 %v4943_v18, %v4941_v17  ;;  %687 = vperm.xlu0 %4814, %v681_v37   ;;  %692 = vperm.xlu1 %4815, %v682_v41   ;;  %v684_v51 = vld [vmem:[%s5396_s4 + $0x18] sm:$0xff]  ;;  %v1340_v52 = vld [vmem:[%s5398_s6] sm:$0xff]  ;;  %v1341_v53 = vld [vmem:[%s5398_s6 + $0x8] sm:$0xff]  ;;  %v5038_v58 = vpack.c.bf16 %v202_v26, %v195_v25 }
   0xd   :  { %v166_v45 = vand.u32 4294901760, %v165_v38  ;;  %v4998_v46 = vpack.c.bf16 %v204_v40, %v197_v39  ;;  %v176_v48 = vand.u32 4294901760, %v175_v43  ;;  %v1342_v54 = vld [vmem:[%s5398_s6 + $0x10] sm:$0xff]  ;;  %v1343_v55 = vld [vmem:[%s5398_s6 + $0x18] sm:$0xff]  ;;  %v3228_v56 = vld [vmem:[%s5401_s9] sm:$0xff]  ;;  %vm705_vm1 = vcmask 261120  }
   0xe   :  { %4020 = vmatprep.mubr.f32.mxu0 %v156_v42  ;;  %v186_v50 = vand.u32 4294901760, %v185_v44  ;;  %v3229_v57 = vld [vmem:[%s5401_s9 + $0x8] sm:$0xff]  ;;  %v3230_v59 = vld [vmem:[%s5401_s9 + $0x10] sm:$0xff]  ;;  %v3231_v60 = vld [vmem:[%s5401_s9 + $0x18] sm:$0xff]  ;;  %vm4842_vm2 = vmmov 0  }
   0xf   :  { %4021 = vmatmul.mubr.f32.vlgmr.msra.gmra.mrb[0].mxu0 %v166_v45  ;;  %4459 = vmatprep.subr.bf16.mxu0 %v4998_v46  ;;  %v3261_v61 = vld [vmem:[%s5403_s11] sm:$0xff]  ;;  %v678_v5 = vld [vmem:[%s5395_s3 + $0x8] sm:$0xff]  ;;  %v679_v6 = vld [vmem:[%s5395_s3 + $0x10] sm:$0xff] }
  0x10   :  { %4461 = vmatpush3.bf16.msra.mxu0 %v4998_v46  ;;  %4023 = vmatprep.mubr.f32.mxu0 %v176_v48  ;;  %v677_v62 = vld [vmem:[%s5395_s3] sm:$0xff]  ;;  %v710_v8 = vsel %vm705_vm1, %v678_v5, 0  ;;  %v713_v9 = vsel %vm705_vm1, %v679_v6, 0 }
  0x11   :  { %4463 = vmatprep.subr.bf16.mxu0 %v5002_v47  ;;  %697 = vperm.xlu0 %4814, %v683_v49   ;;  %v707_v63 = vsel %vm705_vm1, %v677_v62, 0  ;;  %v5097_v11 = vand.u32 4294901760, %v710_v8  ;;  %v5099_v13 = vand.u32 4294901760, %v713_v9 }
  0x12   :  { %702 = vperm.xlu1 %4815, %v684_v51   ;;  %v5077_v0 = vand.u32 4294901760, %v707_v63 }
  0x13   :  { %4024 = vmatmul.mubr.f32.gmra.mrb[2].mxu0 %v186_v50 }
  0x14   :  { %4030 = vmatprep.mubr.f32.mxu0 %v4929_v10  ;;  %v5080_v1 = vsub.f32 %v707_v63, %v5077_v0 }
  0x15   :  { %1346 = vperm.xlu0 %4814, %v1340_v52  }
  0x16   :  { %1351 = vperm.xlu1 %4815, %v1341_v53   ;;  %v789_v2 = vand.u32 4294901760, %v5080_v1 }
  0x17   :  { %4031 = vmatmul.mubr.f32.vlgmr.msra.gmra.mrb[0].mxu0 %v4939_v16 }
  0x18   :  { %4465 = vmatpush3.bf16.msra.mxu0 %v5002_v47  ;;  %4033 = vmatprep.mubr.f32.mxu0 %v4951_v21  ;;  %v790_v3 = vsub.f32 %v5080_v1, %v789_v2 }
  0x19   :  { %4467 = vmatprep.subr.bf16.mxu0 %v4937_v15  ;;  %1356 = vperm.xlu0 %4814, %v1342_v54  }
  0x1a   :  { %1361 = vperm.xlu1 %4815, %v1343_v55   ;;  %v791_v4 = vand.u32 4294901760, %v790_v3 }
  0x1b   :  { %4034 = vmatmul.mubr.f32.gmra.mrb[2].mxu0 %v4953_v22 }
  0x1c   :  { %4040 = vmatprep.mubr.f32.mxu0 %v4949_v20  ;;  %4084 = vmatprep.mubr.f32.mxu1 %v791_v4  ;;  %v5103_v20 = vsub.f32 %v710_v8, %v5097_v11 }
  0x1d   :  { %3234 = vperm.xlu0 %4814, %v3228_v56  }
  0x1e   :  { %3239 = vperm.xlu1 %4815, %v3229_v57  }
  0x1f   :  { %4041 = vmatmul.mubr.f32.vlgmr.msra.gmra.mrb[0].mxu0 %v4960_v24  ;;  %v5108_v24 = vsub.f32 %v713_v9, %v5099_v13 }
  0x20   :  { %4469 = vmatpush3.bf16.msra.mxu0 %v4937_v15  ;;  %4043 = vmatprep.mubr.f32.mxu0 %v4970_v29 }
  0x21   :  { %4471 = vmatprep.subr.bf16.mxu0 %v5038_v58  ;;  %3244 = vperm.xlu0 %4814, %v3230_v59   ;;  %v809_v37 = vand.u32 4294901760, %v5108_v24 }
  0x22   :  { %3249 = vperm.xlu1 %4815, %v3231_v60  }
  0x23   :  { %4044 = vmatmul.mubr.f32.gmra.mrb[2].mxu0 %v4973_v30  ;;  %v810_v52 = vsub.f32 %v5108_v24, %v809_v37 }
  0x24   :  { %4050 = vmatprep.mubr.f32.mxu0 %v154_v28 }
  0x25   :  { %3264 = vperm.xlu0 %4814, %v3261_v61   ;;  %v811_v4 = vand.u32 4294901760, %v810_v52 }
  0x27   :  { %4051 = vmatmul.mubr.f32.vlgmr.msra.gmra.mrb[0].mxu0 %v164_v31  ;;  %v799_v31 = vand.u32 4294901760, %v5103_v20 }
  0x28   :  { %4473 = vmatpush3.bf16.msra.mxu0 %v5038_v58  ;;  %4053 = vmatprep.mubr.f32.mxu0 %v174_v35 }
  0x29   :  { %4475 = vmatprep.subr.bf16.mxu0 %v4937_v15  ;;  %v800_v43 = vsub.f32 %v5103_v20, %v799_v31 }
  0x2b   :  { %4054 = vmatmul.mubr.f32.gmra.mrb[2].mxu0 %v184_v36  ;;  %v801_v59 = vand.u32 4294901760, %v800_v43 }
  0x2c   :  { %4060 = vmatprep.mubr.f32.mxu0 %v4929_v10 }
  0x2f   :  { %4061 = vmatmul.mubr.f32.vlgmr.msra.gmra.mrb[0].mxu0 %v4939_v16 }
  0x30   :  { %4477 = vmatpush3.bf16.msra.mxu0 %v4937_v15  ;;  %4063 = vmatprep.mubr.f32.mxu0 %v4951_v21 }
  0x33   :  { %4064 = vmatmul.mubr.f32.gmra.mrb[2].mxu0 %v4953_v22 }
  0x34   :  { %4070 = vmatprep.mubr.f32.mxu0 %v4929_v10  ;;  %v680_v10 = vld [vmem:[%s5395_s3 + $0x18] sm:$0xff] }
  0x35   :  { %v716_v14 = vsel %vm705_vm1, %v680_v10, 0 }
  0x37   :  { %4071 = vmatmul.mubr.f32.vlgmr.msra.gmra.mrb[0].mxu0 %v4939_v16 }
  0x38   :  { %4073 = vmatprep.mubr.f32.mxu0 %v4951_v21 }
  0x3b   :  { %4074 = vmatmul.mubr.f32.gmra.mrb[2].mxu0 %v4953_v22  ;;  %v5105_v22 = vand.u32 4294901760, %v716_v14 }
  0x3d   :  { %v5112_v34 = vsub.f32 %v716_v14, %v5105_v22 }
  0x3f   :  { %v819_v48 = vand.u32 4294901760, %v5112_v34 }
  0x41   :  { %v820_v63 = vsub.f32 %v5112_v34, %v819_v48 }
  0x43   :  { %v821_v10 = vand.u32 4294901760, %v820_v63 }
  0x83   :  { %v55_v7 = vpop.permute.xlu0 %54  ;;  %v65_v12 = vpop.permute.xlu1 %64 }
  0x87   :  { %v60_v16 = vpop.permute.xlu0 %59  ;;  %v70_v25 = vpop.permute.xlu1 %69 }
 0x10a   :  { %v4072_v17 = vpop.f32.mrb[0].mxu0 }
 0x10b   :  { %v4682_v18 = vadd.f32 %v4072_v17, %v60_v16  ;;  %v651_v19 = vpop.f32.mrb[1].mxu0 }
 0x10c   :  { %v4683_v21 = vadd.f32 %v651_v19, %v55_v7  ;;  %v1999_v19 = vld [vmem:[%s5400_s8 + $0x8] sm:$0xff] }
 0x10d   :  { %v674_v23 = vmax.f32 %v4682_v18, 0.0  ;;  %v1998_v18 = vld [vmem:[%s5400_s8] sm:$0xff] }
 0x10e   :  { %v673_v26 = vmax.f32 %v4683_v21, 0.0  ;;  %v4075_v27 = vpop.f32.mrb[2].mxu0  ;;  %v2003_v21 = vsel %vm72_vm0, %v1998_v18, 0 }
 0x10f   :  { %v722_v28 = vand.u32 4294901760, %v674_v23  ;;  %v4684_v29 = vadd.f32 %v4075_v27, %v70_v25  ;;  %v663_v30 = vpop.f32.mrb[3].mxu0  ;;  %v2081_v25 = vand.u32 4294901760, %v2003_v21 }
 0x110   :  { %v719_v32 = vand.u32 4294901760, %v673_v26  ;;  %v4685_v33 = vadd.f32 %v663_v30, %v65_v12 }
 0x111   :  { %v836_v35 = vsub.f32 %v674_v23, %v722_v28  ;;  %v676_v36 = vmax.f32 %v4684_v29, 0.0  ;;  %v2082_v30 = vsub.f32 %v2003_v21, %v2081_v25 }
 0x112   :  { %v5115_v38 = vpack.c.bf16 %v722_v28, %v719_v32  ;;  %v829_v39 = vsub.f32 %v673_v26, %v719_v32  ;;  %v675_v40 = vmax.f32 %v4685_v33, 0.0 }
 0x113   :  { %v837_v41 = vand.u32 4294901760, %v836_v35  ;;  %v728_v42 = vand.u32 4294901760, %v676_v36 }
 0x114   :  { %v830_v44 = vand.u32 4294901760, %v829_v39  ;;  %v725_v45 = vand.u32 4294901760, %v675_v40  ;;  %4479 = vmatprep.subr.bf16.mxu1 %v5115_v38  ;;  %v4494_v49 = vpack.c.bf16 %v836_v35, %v829_v39 }
 0x115   :  { %v850_v50 = vsub.f32 %v676_v36, %v728_v42  ;;  %4481 = vmatpush3.bf16.msra.mxu1 %v5115_v38  ;;  %v838_v51 = vsub.f32 %v836_v35, %v837_v41 }
 0x116   :  { %v4482_v53 = vpack.c.bf16 %v728_v42, %v725_v45  ;;  %v843_v54 = vsub.f32 %v675_v40, %v725_v45  ;;  %v831_v55 = vsub.f32 %v829_v39, %v830_v44  ;;  %v4510_v56 = vpack.c.bf16 %v837_v41, %v830_v44 }
 0x117   :  { %v851_v57 = vand.u32 4294901760, %v850_v50  ;;  %v839_v60 = vand.u32 4294901760, %v838_v51  ;;  %v688_v51 = vpop.permute.xlu0 %687 }
 0x118   :  { %v844_v61 = vand.u32 4294901760, %v843_v54  ;;  %4483 = vmatprep.subr.bf16.mxu1 %v4482_v53  ;;  %v832_v62 = vand.u32 4294901760, %v831_v55  ;;  %v4498_v3 = vpack.c.bf16 %v850_v50, %v843_v54 }
 0x119   :  { %4485 = vmatpush3.bf16.msra.mxu1 %v4482_v53  ;;  %v852_v5 = vsub.f32 %v850_v50, %v851_v57  ;;  %v693_v50 = vpop.permute.xlu1 %692 }
 0x11a   :  { %v4486_v6 = vpack.c.bf16 %v839_v60, %v832_v62  ;;  %v845_v7 = vsub.f32 %v843_v54, %v844_v61  ;;  %v4514_v8 = vpack.c.bf16 %v851_v57, %v844_v61 }
 0x11b   :  { %v853_v9 = vand.u32 4294901760, %v852_v5  ;;  %v698_v5 = vpop.permute.xlu0 %697 }
 0x11c   :  { %4085 = vmatmul.mubr.f32.vlgmr.msra.gmra.mrb[0].mxu1 %v801_v59  ;;  %4487 = vmatprep.subr.bf16.mxu1 %v4486_v6  ;;  %v846_v12 = vand.u32 4294901760, %v845_v7 }
 0x11d   :  { %4489 = vmatpush3.bf16.msra.mxu1 %v4486_v6  ;;  %4087 = vmatprep.mubr.f32.mxu1 %v811_v4  ;;  %v703_v63 = vpop.permute.xlu1 %702 }
 0x11e   :  { %v4490_v14 = vpack.c.bf16 %v853_v9, %v846_v12 }
 0x120   :  { %4088 = vmatmul.mubr.f32.gmra.mrb[2].mxu1 %v821_v10  ;;  %4491 = vmatprep.subr.bf16.mxu1 %v4490_v14 }
 0x121   :  { %4493 = vmatpush3.bf16.msra.mxu1 %v4490_v14  ;;  %4098 = vmatprep.mubr.f32.mxu1 %v5077_v0 }
 0x122   :  { %4495 = vmatprep.subr.bf16.mxu1 %v4494_v49 }
 0x124   :  { %4099 = vmatmul.mubr.f32.vlgmr.msra.gmra.mrb[0].mxu1 %v5097_v11 }
 0x125   :  { %4497 = vmatpush3.bf16.msra.mxu1 %v4494_v49  ;;  %4101 = vmatprep.mubr.f32.mxu1 %v5099_v13 }
 0x126   :  { %4499 = vmatprep.subr.bf16.mxu1 %v4498_v3 }
 0x128   :  { %4102 = vmatmul.mubr.f32.gmra.mrb[2].mxu1 %v5105_v22 }
 0x129   :  { %4501 = vmatpush3.bf16.msra.mxu1 %v4498_v3  ;;  %4112 = vmatprep.mubr.f32.mxu1 %v5080_v1  ;;  %v1336_v1 = vld [vmem:[%s5397_s5] sm:$0xff] }
 0x12a   :  { %4503 = vmatprep.subr.bf16.mxu1 %v5115_v38 }
 0x12c   :  { %4113 = vmatmul.mubr.f32.vlgmr.msra.gmra.mrb[0].mxu1 %v5103_v20  ;;  %v2000_v20 = vld [vmem:[%s5400_s8 + $0x10] sm:$0xff] }
 0x12d   :  { %4505 = vmatpush3.bf16.msra.mxu1 %v5115_v38  ;;  %4115 = vmatprep.mubr.f32.mxu1 %v5108_v24  ;;  %v2009_v23 = vsel %vm72_vm0, %v2000_v20, 0  ;;  %v2001_v24 = vld [vmem:[%s5400_s8 + $0x18] sm:$0xff] }
 0x12e   :  { %4507 = vmatprep.subr.bf16.mxu1 %v4482_v53  ;;  %v2101_v27 = vand.u32 4294901760, %v2009_v23  ;;  %v2012_v28 = vsel %vm72_vm0, %v2001_v24, 0 }
 0x12f   :  { %v2111_v29 = vand.u32 4294901760, %v2012_v28 }
 0x130   :  { %4116 = vmatmul.mubr.f32.gmra.mrb[2].mxu1 %v5112_v34  ;;  %v2102_v32 = vsub.f32 %v2009_v23, %v2101_v27  ;;  %v2083_v34 = vand.u32 4294901760, %v2082_v30 }
 0x131   :  { %4509 = vmatpush3.bf16.msra.mxu1 %v4482_v53  ;;  %4126 = vmatprep.mubr.f32.mxu1 %v789_v2  ;;  %v1365_v2 = vsel %vm705_vm1, %v1336_v1, 0  ;;  %v2112_v33 = vsub.f32 %v2012_v28, %v2111_v29 }
 0x132   :  { %4511 = vmatprep.subr.bf16.mxu1 %v4510_v56  ;;  %v5160_v16 = vand.u32 4294901760, %v1365_v2  ;;  %v2103_v36 = vand.u32 4294901760, %v2102_v32 }
 0x134   :  { %4127 = vmatmul.mubr.f32.vlgmr.msra.gmra.mrb[0].mxu1 %v799_v31  ;;  %v2104_v40 = vsub.f32 %v2102_v32, %v2103_v36 }
 0x135   :  { %4513 = vmatpush3.bf16.msra.mxu1 %v4510_v56  ;;  %4129 = vmatprep.mubr.f32.mxu1 %v809_v37  ;;  %v2113_v37 = vand.u32 4294901760, %v2112_v33 }
 0x136   :  { %4515 = vmatprep.subr.bf16.mxu1 %v4514_v8  ;;  %v2105_v44 = vand.u32 4294901760, %v2104_v40 }
 0x137   :  { %v2114_v41 = vsub.f32 %v2112_v33, %v2113_v37 }
 0x138   :  { %4130 = vmatmul.mubr.f32.gmra.mrb[2].mxu1 %v819_v48 }
 0x139   :  { %4517 = vmatpush3.bf16.msra.mxu1 %v4514_v8  ;;  %4140 = vmatprep.mubr.f32.mxu1 %v5077_v0  ;;  %v2115_v45 = vand.u32 4294901760, %v2114_v41 }
 0x13a   :  { %4519 = vmatprep.subr.bf16.mxu1 %v5115_v38 }
 0x13c   :  { %4141 = vmatmul.mubr.f32.vlgmr.msra.gmra.mrb[0].mxu1 %v5097_v11 }
 0x13d   :  { %4521 = vmatpush3.bf16.msra.mxu1 %v5115_v38  ;;  %4143 = vmatprep.mubr.f32.mxu1 %v5099_v13  ;;  %v2084_v38 = vsub.f32 %v2082_v30, %v2083_v34 }
 0x13e   :  { %4523 = vmatprep.subr.bf16.mxu1 %v4482_v53 }
 0x13f   :  { %v2085_v42 = vand.u32 4294901760, %v2084_v38 }
 0x140   :  { %4144 = vmatmul.mubr.f32.gmra.mrb[2].mxu1 %v5105_v22 }
 0x141   :  { %4525 = vmatpush3.bf16.msra.mxu1 %v4482_v53  ;;  %4154 = vmatprep.mubr.f32.mxu1 %v5077_v0  ;;  %v5163_v0 = vsub.f32 %v1365_v2, %v5160_v16 }
 0x142   :  { %4575 = vmatprep.subr.bf16.mxu1 %v4937_v15 }
 0x144   :  { %4155 = vmatmul.mubr.f32.vlgmr.msra.gmra.mrb[0].mxu1 %v5097_v11  ;;  %v1447_v11 = vand.u32 4294901760, %v5163_v0 }
 0x145   :  { %4157 = vmatprep.mubr.f32.mxu1 %v5099_v13  ;;  %4577 = vmatpush3.bf16.msra.mxu1 %v4937_v15 }
 0x146   :  { %4579 = vmatprep.subr.bf16.mxu1 %v4998_v46  ;;  %v1448_v13 = vsub.f32 %v5163_v0, %v1447_v11 }
 0x148   :  { %4158 = vmatmul.mubr.f32.gmra.mrb[2].mxu1 %v5105_v22  ;;  %v1449_v17 = vand.u32 4294901760, %v1448_v13  ;;  %v2006_v22 = vsel %vm72_vm0, %v1999_v19, 0 }
 0x149   :  { %v2091_v26 = vand.u32 4294901760, %v2006_v22  ;;  %4248 = vmatprep.mubr.f32.mxu1 %v2085_v42 }
 0x14a   :  { %4168 = vmatprep.mubr.f32.mxu0 %v1449_v17 }
 0x14b   :  { %v2092_v31 = vsub.f32 %v2006_v22, %v2091_v26 }
 0x14d   :  { %v2093_v35 = vand.u32 4294901760, %v2092_v31 }
 0x14f   :  { %v2094_v39 = vsub.f32 %v2092_v31, %v2093_v35 }
 0x151   :  { %v2095_v43 = vand.u32 4294901760, %v2094_v39 }
 0x153   :  { %4249 = vmatmul.mubr.f32.vlgmr.msra.gmra.mrb[4].mxu1 %v2095_v43 }
 0x154   :  { %4581 = vmatpush3.bf16.msra.mxu1 %v4998_v46  ;;  %4251 = vmatprep.mubr.f32.mxu1 %v2105_v44  ;;  %v1337_v46 = vld [vmem:[%s5397_s5 + $0x8] sm:$0xff] }
 0x155   :  { %4583 = vmatprep.subr.bf16.mxu1 %v5002_v47 }
 0x157   :  { %4252 = vmatmul.mubr.f32.gmra.mrb[6].mxu1 %v2115_v45 }
 0x158   :  { %4258 = vmatprep.mubr.f32.mxu1 %v2081_v25 }
 0x15b   :  { %4259 = vmatmul.mubr.f32.vlgmr.msra.gmra.mrb[4].mxu1 %v2091_v26 }
 0x15c   :  { %4585 = vmatpush3.bf16.msra.mxu1 %v5002_v47  ;;  %4261 = vmatprep.mubr.f32.mxu1 %v2101_v27  ;;  %v1338_v47 = vld [vmem:[%s5397_s5 + $0x10] sm:$0xff] }
 0x15d   :  { %4587 = vmatprep.subr.bf16.mxu1 %v4937_v15  ;;  %v1371_v48 = vsel %vm705_vm1, %v1338_v47, 0 }
 0x15e   :  { %v5207_v52 = vand.u32 4294901760, %v1371_v48 }
 0x15f   :  { %4262 = vmatmul.mubr.f32.gmra.mrb[6].mxu1 %v2111_v29 }
 0x160   :  { %4268 = vmatprep.mubr.f32.mxu1 %v2082_v30  ;;  %v5216_v62 = vsub.f32 %v1371_v48, %v5207_v52 }
 0x162   :  { %v1467_v13 = vand.u32 4294901760, %v5216_v62 }
 0x163   :  { %4269 = vmatmul.mubr.f32.vlgmr.msra.gmra.mrb[4].mxu1 %v2092_v31 }
 0x164   :  { %4589 = vmatpush3.bf16.msra.mxu1 %v4937_v15  ;;  %4271 = vmatprep.mubr.f32.mxu1 %v2102_v32 }
 0x165   :  { %4591 = vmatprep.subr.bf16.mxu1 %v5038_v58 }
 0x167   :  { %4272 = vmatmul.mubr.f32.gmra.mrb[6].mxu1 %v2112_v33 }
 0x168   :  { %4278 = vmatprep.mubr.f32.mxu1 %v2083_v34 }
 0x16b   :  { %4279 = vmatmul.mubr.f32.vlgmr.msra.gmra.mrb[4].mxu1 %v2093_v35 }
 0x16c   :  { %4593 = vmatpush3.bf16.msra.mxu1 %v5038_v58  ;;  %4281 = vmatprep.mubr.f32.mxu1 %v2103_v36  ;;  %v1368_v58 = vsel %vm705_vm1, %v1337_v46, 0 }
 0x16d   :  { %4595 = vmatprep.subr.bf16.mxu1 %v4937_v15  ;;  %v5205_v49 = vand.u32 4294901760, %v1368_v58 }
 0x16f   :  { %4282 = vmatmul.mubr.f32.gmra.mrb[6].mxu1 %v2113_v37  ;;  %v5211_v57 = vsub.f32 %v1368_v58, %v5205_v49 }
 0x170   :  { %4288 = vmatprep.mubr.f32.mxu1 %v2081_v25 }
 0x171   :  { %v1457_v9 = vand.u32 4294901760, %v5211_v57 }
 0x173   :  { %4289 = vmatmul.mubr.f32.vlgmr.msra.gmra.mrb[4].mxu1 %v2091_v26  ;;  %v1458_v22 = vsub.f32 %v5211_v57, %v1457_v9 }
 0x174   :  { %4597 = vmatpush3.bf16.msra.mxu1 %v4937_v15  ;;  %4291 = vmatprep.mubr.f32.mxu1 %v2101_v27  ;;  %v1339_v15 = vld [vmem:[%s5397_s5 + $0x18] sm:$0xff] }
 0x175   :  { %v1374_v53 = vsel %vm705_vm1, %v1339_v15, 0  ;;  %v1459_v35 = vand.u32 4294901760, %v1458_v22 }
 0x176   :  { %v5213_v60 = vand.u32 4294901760, %v1374_v53 }
 0x177   :  { %4292 = vmatmul.mubr.f32.gmra.mrb[6].mxu1 %v2111_v29 }
 0x178   :  { %4298 = vmatprep.mubr.f32.mxu1 %v2081_v25  ;;  %v5220_v14 = vsub.f32 %v1374_v53, %v5213_v60  ;;  %v1996_v53 = vld [vmem:[%s5399_s7 + $0x10] sm:$0xff] }
 0x17a   :  { %v1477_v25 = vand.u32 4294901760, %v5220_v14 }
 0x17b   :  { %4299 = vmatmul.mubr.f32.vlgmr.msra.gmra.mrb[4].mxu1 %v2091_v26 }
 0x17c   :  { %4301 = vmatprep.mubr.f32.mxu1 %v2101_v27  ;;  %v1478_v39 = vsub.f32 %v5220_v14, %v1477_v25 }
 0x17e   :  { %v1479_v47 = vand.u32 4294901760, %v1478_v39 }
 0x17f   :  { %4302 = vmatmul.mubr.f32.gmra.mrb[6].mxu1 %v2111_v29  ;;  %v1468_v29 = vsub.f32 %v5216_v62, %v1467_v13 }
 0x181   :  { %v1469_v41 = vand.u32 4294901760, %v1468_v29 }
 0x217   :  { %v4156_v54 = vpop.f32.mrb[0].mxu1 }
 0x218   :  { %v4686_v55 = vadd.f32 %v4156_v54, %v693_v50  ;;  %v1310_v56 = vpop.f32.mrb[1].mxu1 }
 0x219   :  { %v4687_v59 = vadd.f32 %v1310_v56, %v688_v51  ;;  %v1997_v56 = vld [vmem:[%s5399_s7 + $0x18] sm:$0xff] }
 0x21a   :  { %v1333_v61 = vmax.f32 %v4686_v55, 0.0  ;;  %v2609_v55 = vsel %vm705_vm1, %v1996_v53, 0 }
 0x21b   :  { %v1332_v3 = vmax.f32 %v4687_v59, 0.0  ;;  %v4159_v4 = vpop.f32.mrb[2].mxu1  ;;  %v1352_v59 = vpop.permute.xlu1 %1351 }
 0x21c   :  { %v1380_v6 = vand.u32 4294901760, %v1333_v61  ;;  %v4688_v7 = vadd.f32 %v4159_v4, %v703_v63  ;;  %v1322_v8 = vpop.f32.mrb[3].mxu1 }
 0x21d   :  { %v1377_v10 = vand.u32 4294901760, %v1332_v3  ;;  %v4689_v12 = vadd.f32 %v1322_v8, %v698_v5 }
 0x21e   :  { %v1494_v1 = vsub.f32 %v1333_v61, %v1380_v6  ;;  %v1335_v2 = vmax.f32 %v4688_v7, 0.0  ;;  %v5287_v61 = vand.u32 4294901760, %v2609_v55 }
 0x21f   :  { %v5223_v17 = vpack.c.bf16 %v1380_v6, %v1377_v10  ;;  %v1487_v18 = vsub.f32 %v1332_v3, %v1377_v10  ;;  %v1334_v19 = vmax.f32 %v4689_v12, 0.0  ;;  %v1362_v10 = vpop.permute.xlu1 %1361 }
 0x220   :  { %v1495_v20 = vand.u32 4294901760, %v1494_v1  ;;  %v1386_v21 = vand.u32 4294901760, %v1335_v2 }
 0x221   :  { %v1488_v23 = vand.u32 4294901760, %v1487_v18  ;;  %v1383_v24 = vand.u32 4294901760, %v1334_v19  ;;  %4527 = vmatprep.subr.bf16.mxu0 %v5223_v17  ;;  %v4542_v26 = vpack.c.bf16 %v1494_v1, %v1487_v18 }
 0x222   :  { %v1508_v27 = vsub.f32 %v1335_v2, %v1386_v21  ;;  %4529 = vmatpush3.bf16.msra.mxu0 %v5223_v17  ;;  %v1496_v28 = vsub.f32 %v1494_v1, %v1495_v20 }
 0x223   :  { %v4530_v30 = vpack.c.bf16 %v1386_v21, %v1383_v24  ;;  %v1501_v31 = vsub.f32 %v1334_v19, %v1383_v24  ;;  %v1489_v32 = vsub.f32 %v1487_v18, %v1488_v23  ;;  %v4558_v33 = vpack.c.bf16 %v1495_v20, %v1488_v23 }
 0x224   :  { %v1509_v34 = vand.u32 4294901760, %v1508_v27  ;;  %v1497_v36 = vand.u32 4294901760, %v1496_v28 }
 0x225   :  { %v1502_v37 = vand.u32 4294901760, %v1501_v31  ;;  %4531 = vmatprep.subr.bf16.mxu0 %v4530_v30  ;;  %v1490_v38 = vand.u32 4294901760, %v1489_v32  ;;  %v4546_v40 = vpack.c.bf16 %v1508_v27, %v1501_v31 }
 0x226   :  { %4533 = vmatpush3.bf16.msra.mxu0 %v4530_v30  ;;  %v1510_v42 = vsub.f32 %v1508_v27, %v1509_v34 }
 0x227   :  { %v4534_v43 = vpack.c.bf16 %v1497_v36, %v1490_v38  ;;  %v1503_v44 = vsub.f32 %v1501_v31, %v1502_v37  ;;  %v4562_v45 = vpack.c.bf16 %v1509_v34, %v1502_v37 }
 0x228   :  { %v1511_v46 = vand.u32 4294901760, %v1510_v42 }
 0x229   :  { %4169 = vmatmul.mubr.f32.vlgmr.msra.gmra.mrb[4].mxu0 %v1459_v35  ;;  %4535 = vmatprep.subr.bf16.mxu0 %v4534_v43  ;;  %v1504_v58 = vand.u32 4294901760, %v1503_v44 }
 0x22a   :  { %4537 = vmatpush3.bf16.msra.mxu0 %v4534_v43  ;;  %4171 = vmatprep.mubr.f32.mxu0 %v1469_v41 }
 0x22b   :  { %v4538_v48 = vpack.c.bf16 %v1511_v46, %v1504_v58 }
 0x22d   :  { %4172 = vmatmul.mubr.f32.gmra.mrb[6].mxu0 %v1479_v47  ;;  %4539 = vmatprep.subr.bf16.mxu0 %v4538_v48 }
 0x22e   :  { %4541 = vmatpush3.bf16.msra.mxu0 %v4538_v48  ;;  %4182 = vmatprep.mubr.f32.mxu0 %v5160_v16 }
 0x22f   :  { %4543 = vmatprep.subr.bf16.mxu0 %v4542_v26 }
 0x231   :  { %4183 = vmatmul.mubr.f32.vlgmr.msra.gmra.mrb[4].mxu0 %v5205_v49 }
 0x232   :  { %4545 = vmatpush3.bf16.msra.mxu0 %v4542_v26  ;;  %4185 = vmatprep.mubr.f32.mxu0 %v5207_v52 }
 0x233   :  { %4547 = vmatprep.subr.bf16.mxu0 %v4546_v40 }
 0x235   :  { %4186 = vmatmul.mubr.f32.gmra.mrb[6].mxu0 %v5213_v60 }
 0x236   :  { %4549 = vmatpush3.bf16.msra.mxu0 %v4546_v40  ;;  %4196 = vmatprep.mubr.f32.mxu0 %v5163_v0  ;;  %v1994_v0 = vld [vmem:[%s5399_s7] sm:$0xff] }
 0x237   :  { %4551 = vmatprep.subr.bf16.mxu0 %v5223_v17 }
 0x239   :  { %4197 = vmatmul.mubr.f32.vlgmr.msra.gmra.mrb[4].mxu0 %v5211_v57 }
 0x23a   :  { %4553 = vmatpush3.bf16.msra.mxu0 %v5223_v17  ;;  %4199 = vmatprep.mubr.f32.mxu0 %v5216_v62  ;;  %v2612_v62 = vsel %vm705_vm1, %v1997_v56, 0  ;;  %v3260_v56 = vld [vmem:[%s5402_s10] sm:$0xff]  ;;  %s4844_s10 = smov [#allocation2]  }
 0x23b   :  { %4555 = vmatprep.subr.bf16.mxu0 %v4530_v30  ;;  %v5293_v7 = vand.u32 4294901760, %v2612_v62  ;;  %s3762_s26 = sshll.u32 %s4844_s10, 4  ;;  %s3763_s26 = int_to_ptr.vmem [resolvable:$true] %s3762_s26 }
 0x23c   :  { %s4816_s27 = scalar_lea.vmem %s3763_s26, 128  ;;  %p4821_p1 = scmp.lt.s32.totalorder %s3763_s26, %s3763_s26 }
 0x23d   :  { %4200 = vmatmul.mubr.f32.gmra.mrb[6].mxu0 %v5220_v14  ;;  %v5300_v21 = vsub.f32 %v2612_v62, %v5293_v7  ;;  %p4817_p0 = scmp.ne.s32.totalorder %s3763_s26, %s4816_s27  ;;  %p4822_p2 = scmp.lt.s32.totalorder %s4816_s27, %s4816_s27 }
 0x23e   :  { %4557 = vmatpush3.bf16.msra.mxu0 %v4530_v30  ;;  %4210 = vmatprep.mubr.f32.mxu0 %v1447_v11  ;;  %v2603_v11 = vsel %vm705_vm1, %v1994_v0, 0 }
 0x23f   :  { %4559 = vmatprep.subr.bf16.mxu0 %v4558_v33  ;;  %v5265_v15 = vand.u32 4294901760, %v2603_v11  ;;  %p4823_p3 = por %p4822_p2, %p4821_p1 }
 0x241   :  { %4211 = vmatmul.mubr.f32.vlgmr.msra.gmra.mrb[4].mxu0 %v1457_v9  ;;  %v5268_v50 = vsub.f32 %v2603_v11, %v5265_v15  ;;  %v5296_v9 = vsub.f32 %v2609_v55, %v5287_v61  ;;  %p4824_p4 = pnand %p4823_p3, %p4817_p0 }
 0x242   :  { %4561 = vmatpush3.bf16.msra.mxu0 %v4558_v33  ;;  %4213 = vmatprep.mubr.f32.mxu0 %v1467_v13  ;;  %v2715_v33 = vand.u32 4294901760, %v5300_v21 }
 0x243   :  { %4563 = vmatprep.subr.bf16.mxu0 %v4562_v45  ;;  %v2685_v51 = vand.u32 4294901760, %v5268_v50  ;;  %v2705_v24 = vand.u32 4294901760, %v5296_v9 }
 0x244   :  { %v2716_v47 = vsub.f32 %v5300_v21, %v2715_v33 }
 0x245   :  { %4214 = vmatmul.mubr.f32.gmra.mrb[6].mxu0 %v1477_v25  ;;  %v2706_v37 = vsub.f32 %v5296_v9, %v2705_v24 }
 0x246   :  { %4565 = vmatpush3.bf16.msra.mxu0 %v4562_v45  ;;  %4224 = vmatprep.mubr.f32.mxu0 %v5160_v16  ;;  %v2717_v53 = vand.u32 4294901760, %v2716_v47 }
 0x247   :  { %4567 = vmatprep.subr.bf16.mxu0 %v5223_v17  ;;  %v2707_v48 = vand.u32 4294901760, %v2706_v37 }
 0x249   :  { %4225 = vmatmul.mubr.f32.vlgmr.msra.gmra.mrb[4].mxu0 %v5205_v49 }
 0x24a   :  { %4569 = vmatpush3.bf16.msra.mxu0 %v5223_v17  ;;  %4227 = vmatprep.mubr.f32.mxu0 %v5207_v52 }
 0x24b   :  { %4571 = vmatprep.subr.bf16.mxu0 %v4530_v30 }
 0x24d   :  { %4228 = vmatmul.mubr.f32.gmra.mrb[6].mxu0 %v5213_v60 }
 0x24e   :  { %4573 = vmatpush3.bf16.msra.mxu0 %v4530_v30  ;;  %4238 = vmatprep.mubr.f32.mxu0 %v5160_v16  ;;  %v2686_v16 = vsub.f32 %v5268_v50, %v2685_v51 }
 0x251   :  { %4239 = vmatmul.mubr.f32.vlgmr.msra.gmra.mrb[4].mxu0 %v5205_v49  ;;  %v2687_v49 = vand.u32 4294901760, %v2686_v16 }
 0x252   :  { %4241 = vmatprep.mubr.f32.mxu0 %v5207_v52  ;;  %v1995_v52 = vld [vmem:[%s5399_s7 + $0x8] sm:$0xff] }
 0x253   :  { %4312 = vmatprep.mubr.f32.mxu1 %v2687_v49  ;;  %v2606_v54 = vsel %vm705_vm1, %v1995_v52, 0 }
 0x254   :  { %v5285_v57 = vand.u32 4294901760, %v2606_v54 }
 0x255   :  { %4242 = vmatmul.mubr.f32.gmra.mrb[6].mxu0 %v5213_v60  ;;  %v1347_v60 = vpop.permute.xlu0 %1346 }
 0x256   :  { %v5291_v5 = vsub.f32 %v2606_v54, %v5285_v57 }
 0x258   :  { %v2695_v18 = vand.u32 4294901760, %v5291_v5 }
 0x259   :  { %v1357_v1 = vpop.permute.xlu0 %1356 }
 0x25a   :  { %v2696_v30 = vsub.f32 %v5291_v5, %v2695_v18 }
 0x25c   :  { %v2697_v43 = vand.u32 4294901760, %v2696_v30 }
 0x324   :  { %v4240_v63 = vpop.f32.mrb[4].mxu0 }
 0x325   :  { %v4690_v3 = vadd.f32 %v4240_v63, %v1352_v59  ;;  %v1968_v4 = vpop.f32.mrb[5].mxu0 }
 0x326   :  { %v4691_v6 = vadd.f32 %v1968_v4, %v1347_v60  ;;  %v3235_v60 = vpop.permute.xlu0 %3234 }
 0x327   :  { %v1991_v8 = vmax.f32 %v4690_v3, 0.0 }
 0x328   :  { %v1990_v12 = vmax.f32 %v4691_v6, 0.0  ;;  %v4243_v14 = vpop.f32.mrb[6].mxu0 }
 0x329   :  { %v2618_v2 = vand.u32 4294901760, %v1991_v8  ;;  %v4692_v13 = vadd.f32 %v4243_v14, %v1362_v10  ;;  %v1980_v17 = vpop.f32.mrb[7].mxu0 }
 0x32a   :  { %v2615_v19 = vand.u32 4294901760, %v1990_v12  ;;  %v4693_v20 = vadd.f32 %v1980_v17, %v1357_v1 }
 0x32b   :  { %v2732_v22 = vsub.f32 %v1991_v8, %v2618_v2  ;;  %v1993_v23 = vmax.f32 %v4692_v13, 0.0 }
 0x32c   :  { %v5303_v25 = vpack.c.bf16 %v2618_v2, %v2615_v19  ;;  %v2725_v26 = vsub.f32 %v1990_v12, %v2615_v19  ;;  %v1992_v27 = vmax.f32 %v4693_v20, 0.0 }
 0x32d   :  { %v2733_v28 = vand.u32 4294901760, %v2732_v22  ;;  %v2624_v29 = vand.u32 4294901760, %v1993_v23 }
 0x32e   :  { %v2726_v31 = vand.u32 4294901760, %v2725_v26  ;;  %v2621_v32 = vand.u32 4294901760, %v1992_v27  ;;  %4599 = vmatprep.subr.bf16.mxu1 %v5303_v25  ;;  %v4614_v34 = vpack.c.bf16 %v2732_v22, %v2725_v26 }
 0x32f   :  { %v2746_v35 = vsub.f32 %v1993_v23, %v2624_v29  ;;  %4601 = vmatpush3.bf16.msra.mxu1 %v5303_v25  ;;  %v2734_v36 = vsub.f32 %v2732_v22, %v2733_v28 }
 0x330   :  { %v4602_v38 = vpack.c.bf16 %v2624_v29, %v2621_v32  ;;  %v2739_v39 = vsub.f32 %v1992_v27, %v2621_v32  ;;  %v2727_v40 = vsub.f32 %v2725_v26, %v2726_v31  ;;  %v4630_v41 = vpack.c.bf16 %v2733_v28, %v2726_v31 }
 0x331   :  { %v2747_v42 = vand.u32 4294901760, %v2746_v35  ;;  %v2735_v44 = vand.u32 4294901760, %v2734_v36 }
 0x332   :  { %v2740_v45 = vand.u32 4294901760, %v2739_v39  ;;  %4603 = vmatprep.subr.bf16.mxu1 %v4602_v38  ;;  %v2728_v46 = vand.u32 4294901760, %v2727_v40  ;;  %v4618_v58 = vpack.c.bf16 %v2746_v35, %v2739_v39 }
 0x333   :  { %4605 = vmatpush3.bf16.msra.mxu1 %v4602_v38  ;;  %v2748_v0 = vsub.f32 %v2746_v35, %v2747_v42 }
 0x334   :  { %v4606_v11 = vpack.c.bf16 %v2735_v44, %v2728_v46  ;;  %v2741_v16 = vsub.f32 %v2739_v39, %v2740_v45  ;;  %v4634_v49 = vpack.c.bf16 %v2747_v42, %v2740_v45 }
 0x335   :  { %v2749_v52 = vand.u32 4294901760, %v2748_v0 }
 0x336   :  { %4313 = vmatmul.mubr.f32.vlgmr.msra.gmra.mrb[4].mxu1 %v2697_v43  ;;  %4607 = vmatprep.subr.bf16.mxu1 %v4606_v11  ;;  %v2742_v54 = vand.u32 4294901760, %v2741_v16 }
 0x337   :  { %4609 = vmatpush3.bf16.msra.mxu1 %v4606_v11  ;;  %4315 = vmatprep.mubr.f32.mxu1 %v2707_v48 }
 0x338   :  { %v4610_v55 = vpack.c.bf16 %v2749_v52, %v2742_v54 }
 0x33a   :  { %4316 = vmatmul.mubr.f32.gmra.mrb[6].mxu1 %v2717_v53  ;;  %4611 = vmatprep.subr.bf16.mxu1 %v4610_v55 }
 0x33b   :  { %4613 = vmatpush3.bf16.msra.mxu1 %v4610_v55  ;;  %4326 = vmatprep.mubr.f32.mxu1 %v5265_v15 }
 0x33c   :  { %4615 = vmatprep.subr.bf16.mxu1 %v4614_v34 }
 0x33e   :  { %4327 = vmatmul.mubr.f32.vlgmr.msra.gmra.mrb[4].mxu1 %v5285_v57 }
 0x33f   :  { %4617 = vmatpush3.bf16.msra.mxu1 %v4614_v34  ;;  %4329 = vmatprep.mubr.f32.mxu1 %v5287_v61 }
 0x340   :  { %4619 = vmatprep.subr.bf16.mxu1 %v4618_v58 }
 0x342   :  { %4330 = vmatmul.mubr.f32.gmra.mrb[6].mxu1 %v5293_v7 }
 0x343   :  { %4621 = vmatpush3.bf16.msra.mxu1 %v4618_v58  ;;  %4340 = vmatprep.mubr.f32.mxu1 %v5268_v50  ;;  %v4841_v50 = vmov 0.0|0.0  }
 0x344   :  { %4623 = vmatprep.subr.bf16.mxu1 %v5303_v25  ;;  %4646 = vmatprep.subr.bf16.mxu0 %v4841_v50 }
 0x346   :  { %4341 = vmatmul.mubr.f32.vlgmr.msra.gmra.mrb[4].mxu1 %v5291_v5 }
 0x347   :  { %4625 = vmatpush3.bf16.msra.mxu1 %v5303_v25  ;;  %4343 = vmatprep.mubr.f32.mxu1 %v5296_v9  ;;  %v3245_v9 = vpop.permute.xlu0 %3244 }
 0x348   :  { %4627 = vmatprep.subr.bf16.mxu1 %v4602_v38 }
 0x34a   :  { %4344 = vmatmul.mubr.f32.gmra.mrb[6].mxu1 %v5300_v21 }
 0x34b   :  { %4629 = vmatpush3.bf16.msra.mxu1 %v4602_v38  ;;  %4354 = vmatprep.mubr.f32.mxu1 %v2685_v51  ;;  %v4843_v51 = vmov 0.0   ;;  %v3265_v47 = vpop.permute.xlu0 %3264 }
 0x34c   :  { %4631 = vmatprep.subr.bf16.mxu1 %v4630_v41  ;;  %4396 = vmatprep.mubr.msk.f32.mxu0 %vm4842_vm2, %v4843_v51 }
 0x34e   :  { %4355 = vmatmul.mubr.f32.vlgmr.msra.gmra.mrb[4].mxu1 %v2695_v18 }
 0x34f   :  { %4633 = vmatpush3.bf16.msra.mxu1 %v4630_v41  ;;  %4357 = vmatprep.mubr.f32.mxu1 %v2705_v24 }
 0x350   :  { %4635 = vmatprep.subr.bf16.mxu1 %v4634_v49 }
 0x352   :  { %4358 = vmatmul.mubr.f32.gmra.mrb[6].mxu1 %v2715_v33 }
 0x353   :  { %4637 = vmatpush3.bf16.msra.mxu1 %v4634_v49  ;;  %4368 = vmatprep.mubr.f32.mxu1 %v5265_v15 }
 0x354   :  { %4639 = vmatprep.subr.bf16.mxu1 %v5303_v25 }
 0x356   :  { %4369 = vmatmul.mubr.f32.vlgmr.msra.gmra.mrb[4].mxu1 %v5285_v57 }
 0x357   :  { %4641 = vmatpush3.bf16.msra.mxu1 %v5303_v25  ;;  %4371 = vmatprep.mubr.f32.mxu1 %v5287_v61 }
 0x358   :  { %4643 = vmatprep.subr.bf16.mxu1 %v4602_v38 }
 0x35a   :  { %4372 = vmatmul.mubr.f32.gmra.mrb[6].mxu1 %v5293_v7 }
 0x35b   :  { %4645 = vmatpush3.bf16.msra.mxu1 %v4602_v38  ;;  %4382 = vmatprep.mubr.f32.mxu1 %v5265_v15  ;;  %v3268_v15 = vsel %vm705_vm1, %v3260_v56, 0 }
 0x35c   :  { %v5348_v59 = vand.u32 4294901760, %v3268_v15 }
 0x35e   :  { %4383 = vmatmul.mubr.f32.vlgmr.msra.gmra.mrb[4].mxu1 %v5285_v57  ;;  %v3240_v57 = vpop.permute.xlu1 %3239  ;;  %v5351_v3 = vsub.f32 %v3268_v15, %v5348_v59 }
 0x35f   :  { %4385 = vmatprep.mubr.f32.mxu1 %v5287_v61 }
 0x360   :  { %v3341_v1 = vand.u32 4294901760, %v5351_v3 }
 0x362   :  { %4386 = vmatmul.mubr.f32.gmra.mrb[6].mxu1 %v5293_v7  ;;  %v3250_v6 = vpop.permute.xlu1 %3249  ;;  %v3342_v24 = vsub.f32 %v5351_v3, %v3341_v1 }
 0x364   :  { %v3343_v36 = vand.u32 4294901760, %v3342_v24 }
 0x431   :  { %v4384_v61 = vpop.f32.mrb[4].mxu1 }
 0x432   :  { %v3253_v62 = vadd.f32 %v4384_v61, %v3240_v57  ;;  %v3206_v63 = vpop.f32.mrb[5].mxu1 }
 0x433   :  { %v3252_v4 = vadd.f32 %v3235_v60, %v3206_v63 }
 0x434   :  { %v3257_v5 = vmax.f32 %v3253_v62, 0.0 }
 0x435   :  { %v3256_v7 = vmax.f32 %v3252_v4, 0.0  ;;  %v4387_v8 = vpop.f32.mrb[6].mxu1 }
 0x436   :  { %v3274_v10 = vand.u32 4294901760, %v3257_v5  ;;  %v3255_v12 = vadd.f32 %v4387_v8, %v3250_v6  ;;  %v3218_v14 = vpop.f32.mrb[7].mxu1 }
 0x437   :  { %v3271_v2 = vand.u32 4294901760, %v3256_v7  ;;  %v3254_v13 = vadd.f32 %v3245_v9, %v3218_v14 }
 0x438   :  { %v3358_v17 = vsub.f32 %v3257_v5, %v3274_v10  ;;  %v3259_v18 = vmax.f32 %v3255_v12, 0.0 }
 0x439   :  { %v4647_v19 = vpack.c.bf16 %v3274_v10, %v3271_v2  ;;  %v3351_v20 = vsub.f32 %v3256_v7, %v3271_v2  ;;  %v3258_v21 = vmax.f32 %v3254_v13, 0.0 }
 0x43a   :  { %v3359_v22 = vand.u32 4294901760, %v3358_v17  ;;  %v3280_v23 = vand.u32 4294901760, %v3259_v18 }
 0x43b   :  { %v3352_v25 = vand.u32 4294901760, %v3351_v20  ;;  %v3277_v26 = vand.u32 4294901760, %v3258_v21  ;;  %4648 = vmatpush3.bf16.msra.mxu0 %v4647_v19  ;;  %v4659_v27 = vpack.c.bf16 %v3358_v17, %v3351_v20 }
 0x43c   :  { %v3360_v28 = vsub.f32 %v3358_v17, %v3359_v22  ;;  %v3372_v29 = vsub.f32 %v3259_v18, %v3280_v23  ;;  %4649 = vmatprep.subr.bf16.mxu0 %v4841_v50 }
 0x43d   :  { %v3353_v30 = vsub.f32 %v3351_v20, %v3352_v25  ;;  %v4650_v31 = vpack.c.bf16 %v3280_v23, %v3277_v26  ;;  %v3365_v32 = vsub.f32 %v3258_v21, %v3277_v26  ;;  %v4671_v33 = vpack.c.bf16 %v3359_v22, %v3352_v25 }
 0x43e   :  { %v3361_v34 = vand.u32 4294901760, %v3360_v28  ;;  %v3373_v35 = vand.u32 4294901760, %v3372_v29 }
 0x43f   :  { %v3354_v37 = vand.u32 4294901760, %v3353_v30  ;;  %v3366_v38 = vand.u32 4294901760, %v3365_v32  ;;  %4651 = vmatpush3.bf16.msra.mxu0 %v4650_v31  ;;  %v4662_v39 = vpack.c.bf16 %v3372_v29, %v3365_v32 }
 0x440   :  { %v3374_v40 = vsub.f32 %v3372_v29, %v3373_v35  ;;  %4652 = vmatprep.subr.bf16.mxu0 %v4841_v50 }
 0x441   :  { %v3367_v41 = vsub.f32 %v3365_v32, %v3366_v38  ;;  %v4653_v42 = vpack.c.bf16 %v3361_v34, %v3354_v37  ;;  %v4674_v43 = vpack.c.bf16 %v3373_v35, %v3366_v38 }
 0x442   :  { %v3375_v44 = vand.u32 4294901760, %v3374_v40  ;;  %4397 = vmatmul.mubr.f32.vlgmr.msra.gmra.mrb[8].mxu0 %v3343_v36 }
 0x443   :  { %v3368_v45 = vand.u32 4294901760, %v3367_v41  ;;  %4654 = vmatpush3.bf16.msra.mxu0 %v4653_v42  ;;  %4407 = vmatprep.mubr.msk.f32.mxu0 %vm4842_vm2, %v4843_v51 }
 0x444   :  { %4655 = vmatprep.subr.bf16.mxu0 %v4841_v50 }
 0x445   :  { %v4656_v46 = vpack.c.bf16 %v3375_v44, %v3368_v45 }
 0x447   :  { %4657 = vmatpush3.bf16.msra.mxu0 %v4656_v46 }
 0x448   :  { %4658 = vmatprep.subr.bf16.mxu0 %v4841_v50 }
 0x44a   :  { %4408 = vmatmul.mubr.f32.vlgmr.msra.gmra.mrb[8].mxu0 %v5348_v59 }
 0x44b   :  { %4660 = vmatpush3.bf16.msra.mxu0 %v4659_v27  ;;  %4418 = vmatprep.mubr.msk.f32.mxu0 %vm4842_vm2, %v4843_v51 }
 0x44c   :  { %4661 = vmatprep.subr.bf16.mxu0 %v4841_v50 }
 0x44f   :  { %4663 = vmatpush3.bf16.msra.mxu0 %v4662_v39 }
 0x450   :  { %4664 = vmatprep.subr.bf16.mxu0 %v4841_v50 }
 0x452   :  { %4419 = vmatmul.mubr.f32.vlgmr.msra.gmra.mrb[8].mxu0 %v5351_v3 }
 0x453   :  { %4666 = vmatpush3.bf16.msra.mxu0 %v4647_v19  ;;  %4429 = vmatprep.mubr.msk.f32.mxu0 %vm4842_vm2, %v4843_v51 }
 0x454   :  { %4667 = vmatprep.subr.bf16.mxu0 %v4841_v50 }
 0x457   :  { %4669 = vmatpush3.bf16.msra.mxu0 %v4650_v31 }
 0x458   :  { %4670 = vmatprep.subr.bf16.mxu0 %v4841_v50 }
 0x45a   :  { %4430 = vmatmul.mubr.f32.vlgmr.msra.gmra.mrb[8].mxu0 %v3341_v1 }
 0x45b   :  { %4672 = vmatpush3.bf16.msra.mxu0 %v4671_v33  ;;  %4440 = vmatprep.mubr.msk.f32.mxu0 %vm4842_vm2, %v4843_v51 }
 0x45c   :  { %4673 = vmatprep.subr.bf16.mxu0 %v4841_v50 }
 0x45f   :  { %4675 = vmatpush3.bf16.msra.mxu0 %v4674_v43 }
 0x460   :  { %4676 = vmatprep.subr.bf16.mxu0 %v4841_v50 }
 0x462   :  { %4441 = vmatmul.mubr.f32.vlgmr.msra.gmra.mrb[8].mxu0 %v5348_v59 }
 0x463   :  { %4678 = vmatpush3.bf16.msra.mxu0 %v4647_v19  ;;  %4451 = vmatprep.mubr.msk.f32.mxu0 %vm4842_vm2, %v4843_v51 }
 0x464   :  { %4679 = vmatprep.subr.bf16.mxu0 %v4841_v50 }
 0x467   :  { %4681 = vmatpush3.bf16.msra.mxu0 %v4650_v31 }
 0x46a   :  { %4452 = vmatmul.mubr.f32.vlgmr.msra.gmra.mrb[8].mxu0 %v5348_v59 }
 0x53d   :  { %v3751_v58 = vpop.f32.mrb[8].mxu0 }
 0x53e   :  { %v4694_v48 = vadd.f32 %v3751_v58, %v3265_v47  ;;  %v4453_v0 = vpop.f32.mrb[9].mxu0 }
 0x540   :  { %3755 = vst [vmem:[#allocation2] sm:$0xff] %v4694_v48 }
 0x541   :  { %4827 = shalt.err (!%p4824_p4)
}
 0x542   :  { %s4828_s29 = scalar_lea.hbm %s5404_s12, 128 }
 0x543   :  { %p4829_p5 = scmp.ne.s32.totalorder %s5404_s12, %s4828_s29  ;;  %p4832_p6 = scmp.lt.u32.totalorder %s4828_s29, %s5404_s12 }
 0x545   :  { %p4834_p7 = pnand %p4832_p6, %p4829_p5 }
 0x547   :  { %4837 = shalt.err (!%p4834_p7)
}
 0x548   :  { %3765 = dma.vmem_to_hbm [thread:$0]  %s3763_s26, 128, %s5404_s12, [#allocation3]  }
 0x549   :  { %4838 = dma.done.wait [#allocation3], 128  }
 0x54a   :  { %4839 = vsyncadd [#allocation3], 4294967168 }
 0x54b   :  { %3769 = vsyncpa [#allocation3], 1 }

// kernel: tpu_custom_call.1
= control target key start
LH: loop header
LB: loop body
LE: loop exit
PB: predicated region body
PF: predicated region fallthrough
CT: control target
= control target key end

     0   :  { %vm72_vm0 = vcmask 130048   ;;  %v4840_v9 = vmov 0   ;;  %s5392_s0 = inlined_call_operand.vmem [shape: f32[16,128], index: 0, kind: input, shape index: {}]   ;;  %s5393_s1 = inlined_call_operand.vmem [shape: f32[32,16], index: 1, kind: input, shape index: {}]   ;;  %s5394_s2 = inlined_call_operand.vmem [shape: f32[32,1], index: 2, kind: input, shape index: {}]   ;;  %s5395_s3 = inlined_call_operand.vmem [shape: f32[32,32], index: 3, kind: input, shape index: {}]   ;;  %s5396_s4 = inlined_call_operand.vmem [shape: f32[32,1], index: 4, kind: input, shape index: {}]   ;;  %s5397_s5 = inlined_call_operand.vmem [shape: f32[32,32], index: 5, kind: input, shape index: {}]   ;;  %s5398_s6 = inlined_call_operand.vmem [shape: f32[32,1], index: 6, kind: input, shape index: {}]   ;;  %s5399_s7 = inlined_call_operand.vmem [shape: f32[32,32], index: 7, kind: input, shape index: {}]   ;;  %s5400_s8 = inlined_call_operand.vmem [shape: f32[32,16], index: 8, kind: input, shape index: {}]   ;;  %s5401_s9 = inlined_call_operand.vmem [shape: f32[32,1], index: 9, kind: input, shape index: {}]   ;;  %s5402_s10 = inlined_call_operand.vmem [shape: f32[8,32], index: 10, kind: input, shape index: {}]   ;;  %s5403_s11 = inlined_call_operand.vmem [shape: f32[8,1], index: 11, kind: input, shape index: {}]   ;;  %s5404_s12 = inlined_call_operand.hbm [shape: f32[8,128], index: 12, kind: output, shape index: {}]  }
   0x1   :  { %v42_v0 = vld [vmem:[%s5392_s0] sm:$0xff]  ;;  %v43_v1 = vld [vmem:[%s5392_s0 + $0x8] sm:$0xff]  ;;  %v46_v7 = vld [vmem:[%s5393_s1 + $0x10] sm:$0xff]  ;;  %4814 = vset.pattern.permute.xlu0 %v4840_v9  ;;  %4815 = vset.pattern.permute.xlu1 %v4840_v9 }
   0x2   :  { %v44_v2 = vld [vmem:[%s5393_s1] sm:$0xff]  ;;  %v86_v3 = vand.u32 4294901760, %v42_v0  ;;  %v89_v4 = vand.u32 4294901760, %v43_v1  ;;  %v45_v6 = vld [vmem:[%s5393_s1 + $0x8] sm:$0xff]  ;;  %v47_v8 = vld [vmem:[%s5393_s1 + $0x18] sm:$0xff]  ;;  %v80_v12 = vsel %vm72_vm0, %v46_v7, 0 }
   0x3   :  { %v74_v5 = vsel %vm72_vm0, %v44_v2, 0  ;;  %v77_v11 = vsel %vm72_vm0, %v45_v6, 0  ;;  %v83_v13 = vsel %vm72_vm0, %v47_v8, 0  ;;  %v48_v14 = vld [vmem:[%s5394_s2] sm:$0xff]  ;;  %v50_v19 = vld [vmem:[%s5394_s2 + $0x10] sm:$0xff]  ;;  %v4951_v21 = vand.u32 4294901760, %v80_v12 }
   0x4   :  { %v4929_v10 = vand.u32 4294901760, %v74_v5  ;;  %v4937_v15 = vpack.c.bf16 %v89_v4, %v86_v3  ;;  %v4939_v16 = vand.u32 4294901760, %v77_v11  ;;  %v4941_v17 = vsub.f32 %v42_v0, %v86_v3  ;;  %54 = vperm.xlu0 %4814, %v48_v14   ;;  %v49_v23 = vld [vmem:[%s5394_s2 + $0x8] sm:$0xff]  ;;  %64 = vperm.xlu1 %4815, %v50_v19   ;;  %v51_v27 = vld [vmem:[%s5394_s2 + $0x18] sm:$0xff]  ;;  %v681_v37 = vld [vmem:[%s5396_s4] sm:$0xff] }
   0x5   :  { %v4943_v18 = vsub.f32 %v43_v1, %v89_v4  ;;  %v4953_v22 = vand.u32 4294901760, %v83_v13  ;;  %v4970_v29 = vsub.f32 %v80_v12, %v4951_v21 }
   0x6   :  { %v4949_v20 = vsub.f32 %v74_v5, %v4929_v10  ;;  %4455 = vmatprep.subr.bf16.mxu0 %v4937_v15  ;;  %v4960_v24 = vsub.f32 %v77_v11, %v4939_v16  ;;  %v195_v25 = vand.u32 4294901760, %v4941_v17 }
   0x7   :  { %v202_v26 = vand.u32 4294901760, %v4943_v18  ;;  %4457 = vmatpush3.bf16.msra.mxu0 %v4937_v15  ;;  %v4973_v30 = vsub.f32 %v83_v13, %v4953_v22  ;;  %v174_v35 = vand.u32 4294901760, %v4970_v29 }
   0x8   :  { %v154_v28 = vand.u32 4294901760, %v4949_v20  ;;  %v164_v31 = vand.u32 4294901760, %v4960_v24  ;;  %v196_v32 = vsub.f32 %v4941_v17, %v195_v25  ;;  %59 = vperm.xlu0 %4814, %v49_v23   ;;  %69 = vperm.xlu1 %4815, %v51_v27  }
   0x9   :  { %v203_v33 = vsub.f32 %v4943_v18, %v202_v26  ;;  %v184_v36 = vand.u32 4294901760, %v4973_v30 }
   0xa   :  { %v155_v34 = vsub.f32 %v4949_v20, %v154_v28 }
   0xb   :  { %17 = vsyncpa [#allocation3], 0  ;;  %v165_v38 = vsub.f32 %v4960_v24, %v164_v31  ;;  %v197_v39 = vand.u32 4294901760, %v196_v32  ;;  %v204_v40 = vand.u32 4294901760, %v203_v33  ;;  %v682_v41 = vld [vmem:[%s5396_s4 + $0x8] sm:$0xff]  ;;  %v175_v43 = vsub.f32 %v4970_v29, %v174_v35  ;;  %v683_v49 = vld [vmem:[%s5396_s4 + $0x10] sm:$0xff] }
   0xc   :  { %v156_v42 = vand.u32 4294901760, %v155_v34  ;;  %v185_v44 = vsub.f32 %v4973_v30, %v184_v36  ;;  %v5002_v47 = vpack.c.bf16 %v4943_v18, %v4941_v17  ;;  %687 = vperm.xlu0 %4814, %v681_v37   ;;  %692 = vperm.xlu1 %4815, %v682_v41   ;;  %v684_v51 = vld [vmem:[%s5396_s4 + $0x18] sm:$0xff]  ;;  %v1340_v52 = vld [vmem:[%s5398_s6] sm:$0xff]  ;;  %v1341_v53 = vld [vmem:[%s5398_s6 + $0x8] sm:$0xff]  ;;  %v5038_v58 = vpack.c.bf16 %v202_v26, %v195_v25 }
   0xd   :  { %v166_v45 = vand.u32 4294901760, %v165_v38  ;;  %v4998_v46 = vpack.c.bf16 %v204_v40, %v197_v39  ;;  %v176_v48 = vand.u32 4294901760, %v175_v43  ;;  %v1342_v54 = vld [vmem:[%s5398_s6 + $0x10] sm:$0xff]  ;;  %v1343_v55 = vld [vmem:[%s5398_s6 + $0x18] sm:$0xff]  ;;  %v3228_v56 = vld [vmem:[%s5401_s9] sm:$0xff]  ;;  %vm705_vm1 = vcmask 261120  }
   0xe   :  { %4020 = vmatprep.mubr.f32.mxu0 %v156_v42  ;;  %v186_v50 = vand.u32 4294901760, %v185_v44  ;;  %v3229_v57 = vld [vmem:[%s5401_s9 + $0x8] sm:$0xff]  ;;  %v3230_v59 = vld [vmem:[%s5401_s9 + $0x10] sm:$0xff]  ;;  %v3231_v60 = vld [vmem:[%s5401_s9 + $0x18] sm:$0xff]  ;;  %vm4842_vm2 = vmmov 0  }
   0xf   :  { %4021 = vmatmul.mubr.f32.vlgmr.msra.gmra.mrb[0].mxu0 %v166_v45  ;;  %4459 = vmatprep.subr.bf16.mxu0 %v4998_v46  ;;  %v3261_v61 = vld [vmem:[%s5403_s11] sm:$0xff]  ;;  %v678_v5 = vld [vmem:[%s5395_s3 + $0x8] sm:$0xff]  ;;  %v679_v6 = vld [vmem:[%s5395_s3 + $0x10] sm:$0xff] }
  0x10   :  { %4461 = vmatpush3.bf16.msra.mxu0 %v4998_v46  ;;  %4023 = vmatprep.mubr.f32.mxu0 %v176_v48  ;;  %v677_v62 = vld [vmem:[%s5395_s3] sm:$0xff]  ;;  %v710_v8 = vsel %vm705_vm1, %v678_v5, 0  ;;  %v713_v9 = vsel %vm705_vm1, %v679_v6, 0 }
  0x11   :  { %4463 = vmatprep.subr.bf16.mxu0 %v5002_v47  ;;  %697 = vperm.xlu0 %4814, %v683_v49   ;;  %v707_v63 = vsel %vm705_vm1, %v677_v62, 0  ;;  %v5097_v11 = vand.u32 4294901760, %v710_v8  ;;  %v5099_v13 = vand.u32 4294901760, %v713_v9 }
  0x12   :  { %702 = vperm.xlu1 %4815, %v684_v51   ;;  %v5077_v0 = vand.u32 4294901760, %v707_v63 }
  0x13   :  { %4024 = vmatmul.mubr.f32.gmra.mrb[2].mxu0 %v186_v50 }
  0x14   :  { %4030 = vmatprep.mubr.f32.mxu0 %v4929_v10  ;;  %v5080_v1 = vsub.f32 %v707_v63, %v5077_v0 }
  0x15   :  { %1346 = vperm.xlu0 %4814, %v1340_v52  }
  0x16   :  { %1351 = vperm.xlu1 %4815, %v1341_v53   ;;  %v789_v2 = vand.u32 4294901760, %v5080_v1 }
  0x17   :  { %4031 = vmatmul.mubr.f32.vlgmr.msra.gmra.mrb[0].mxu0 %v4939_v16 }
  0x18   :  { %4465 = vmatpush3.bf16.msra.mxu0 %v5002_v47  ;;  %4033 = vmatprep.mubr.f32.mxu0 %v4951_v21  ;;  %v790_v3 = vsub.f32 %v5080_v1, %v789_v2 }
  0x19   :  { %4467 = vmatprep.subr.bf16.mxu0 %v4937_v15  ;;  %1356 = vperm.xlu0 %4814, %v1342_v54  }
  0x1a   :  { %1361 = vperm.xlu1 %4815, %v1343_v55   ;;  %v791_v4 = vand.u32 4294901760, %v790_v3 }
  0x1b   :  { %4034 = vmatmul.mubr.f32.gmra.mrb[2].mxu0 %v4953_v22 }
  0x1c   :  { %4040 = vmatprep.mubr.f32.mxu0 %v4949_v20  ;;  %4084 = vmatprep.mubr.f32.mxu1 %v791_v4  ;;  %v5103_v20 = vsub.f32 %v710_v8, %v5097_v11 }
  0x1d   :  { %3234 = vperm.xlu0 %4814, %v3228_v56  }
  0x1e   :  { %3239 = vperm.xlu1 %4815, %v3229_v57  }
  0x1f   :  { %4041 = vmatmul.mubr.f32.vlgmr.msra.gmra.mrb[0].mxu0 %v4960_v24  ;;  %v5108_v24 = vsub.f32 %v713_v9, %v5099_v13 }
  0x20   :  { %4469 = vmatpush3.bf16.msra.mxu0 %v4937_v15  ;;  %4043 = vmatprep.mubr.f32.mxu0 %v4970_v29 }
  0x21   :  { %4471 = vmatprep.subr.bf16.mxu0 %v5038_v58  ;;  %3244 = vperm.xlu0 %4814, %v3230_v59   ;;  %v809_v37 = vand.u32 4294901760, %v5108_v24 }
  0x22   :  { %3249 = vperm.xlu1 %4815, %v3231_v60  }
  0x23   :  { %4044 = vmatmul.mubr.f32.gmra.mrb[2].mxu0 %v4973_v30  ;;  %v810_v52 = vsub.f32 %v5108_v24, %v809_v37 }
  0x24   :  { %4050 = vmatprep.mubr.f32.mxu0 %v154_v28 }
  0x25   :  { %3264 = vperm.xlu0 %4814, %v3261_v61   ;;  %v811_v4 = vand.u32 4294901760, %v810_v52 }
  0x27   :  { %4051 = vmatmul.mubr.f32.vlgmr.msra.gmra.mrb[0].mxu0 %v164_v31  ;;  %v799_v31 = vand.u32 4294901760, %v5103_v20 }
  0x28   :  { %4473 = vmatpush3.bf16.msra.mxu0 %v5038_v58  ;;  %4053 = vmatprep.mubr.f32.mxu0 %v174_v35 }
  0x29   :  { %4475 = vmatprep.subr.bf16.mxu0 %v4937_v15  ;;  %v800_v43 = vsub.f32 %v5103_v20, %v799_v31 }
  0x2b   :  { %4054 = vmatmul.mubr.f32.gmra.mrb[2].mxu0 %v184_v36  ;;  %v801_v59 = vand.u32 4294901760, %v800_v43 }
  0x2c   :  { %4060 = vmatprep.mubr.f32.mxu0 %v4929_v10 }
  0x2f   :  { %4061 = vmatmul.mubr.f32.vlgmr.msra.gmra.mrb[0].mxu0 %v4939_v16 }
  0x30   :  { %4477 = vmatpush3.bf16.msra.mxu0 %v4937_v15  ;;  %4063 = vmatprep.mubr.f32.mxu0 %v4951_v21 }
  0x33   :  { %4064 = vmatmul.mubr.f32.gmra.mrb[2].mxu0 %v4953_v22 }
  0x34   :  { %4070 = vmatprep.mubr.f32.mxu0 %v4929_v10  ;;  %v680_v10 = vld [vmem:[%s5395_s3 + $0x18] sm:$0xff] }
  0x35   :  { %v716_v14 = vsel %vm705_vm1, %v680_v10, 0 }
  0x37   :  { %4071 = vmatmul.mubr.f32.vlgmr.msra.gmra.mrb[0].mxu0 %v4939_v16 }
  0x38   :  { %4073 = vmatprep.mubr.f32.mxu0 %v4951_v21 }
  0x3b   :  { %4074 = vmatmul.mubr.f32.gmra.mrb[2].mxu0 %v4953_v22  ;;  %v5105_v22 = vand.u32 4294901760, %v716_v14 }
  0x3d   :  { %v5112_v34 = vsub.f32 %v716_v14, %v5105_v22 }
  0x3f   :  { %v819_v48 = vand.u32 4294901760, %v5112_v34 }
  0x41   :  { %v820_v63 = vsub.f32 %v5112_v34, %v819_v48 }
  0x43   :  { %v821_v10 = vand.u32 4294901760, %v820_v63 }
  0x83   :  { %v55_v7 = vpop.permute.xlu0 %54  ;;  %v65_v12 = vpop.permute.xlu1 %64 }
  0x87   :  { %v60_v16 = vpop.permute.xlu0 %59  ;;  %v70_v25 = vpop.permute.xlu1 %69 }
 0x10a   :  { %v4072_v17 = vpop.f32.mrb[0].mxu0 }
 0x10b   :  { %v4682_v18 = vadd.f32 %v4072_v17, %v60_v16  ;;  %v651_v19 = vpop.f32.mrb[1].mxu0 }
 0x10c   :  { %v4683_v21 = vadd.f32 %v651_v19, %v55_v7  ;;  %v1999_v19 = vld [vmem:[%s5400_s8 + $0x8] sm:$0xff] }
 0x10d   :  { %v674_v23 = vmax.f32 %v4682_v18, 0.0  ;;  %v1998_v18 = vld [vmem:[%s5400_s8] sm:$0xff] }
 0x10e   :  { %v673_v26 = vmax.f32 %v4683_v21, 0.0  ;;  %v4075_v27 = vpop.f32.mrb[2].mxu0  ;;  %v2003_v21 = vsel %vm72_vm0, %v1998_v18, 0 }
 0x10f   :  { %v722_v28 = vand.u32 4294901760, %v674_v23  ;;  %v4684_v29 = vadd.f32 %v4075_v27, %v70_v25  ;;  %v663_v30 = vpop.f32.mrb[3].mxu0  ;;  %v2081_v25 = vand.u32 4294901760, %v2003_v21 }
 0x110   :  { %v719_v32 = vand.u32 4294901760, %v673_v26  ;;  %v4685_v33 = vadd.f32 %v663_v30, %v65_v12 }
 0x111   :  { %v836_v35 = vsub.f32 %v674_v23, %v722_v28  ;;  %v676_v36 = vmax.f32 %v4684_v29, 0.0  ;;  %v2082_v30 = vsub.f32 %v2003_v21, %v2081_v25 }
 0x112   :  { %v5115_v38 = vpack.c.bf16 %v722_v28, %v719_v32  ;;  %v829_v39 = vsub.f32 %v673_v26, %v719_v32  ;;  %v675_v40 = vmax.f32 %v4685_v33, 0.0 }
 0x113   :  { %v837_v41 = vand.u32 4294901760, %v836_v35  ;;  %v728_v42 = vand.u32 4294901760, %v676_v36 }
 0x114   :  { %v830_v44 = vand.u32 4294901760, %v829_v39  ;;  %v725_v45 = vand.u32 4294901760, %v675_v40  ;;  %4479 = vmatprep.subr.bf16.mxu1 %v5115_v38  ;;  %v4494_v49 = vpack.c.bf16 %v836_v35, %v829_v39 }
 0x115   :  { %v850_v50 = vsub.f32 %v676_v36, %v728_v42  ;;  %4481 = vmatpush3.bf16.msra.mxu1 %v5115_v38  ;;  %v838_v51 = vsub.f32 %v836_v35, %v837_v41 }
 0x116   :  { %v4482_v53 = vpack.c.bf16 %v728_v42, %v725_v45  ;;  %v843_v54 = vsub.f32 %v675_v40, %v725_v45  ;;  %v831_v55 = vsub.f32 %v829_v39, %v830_v44  ;;  %v4510_v56 = vpack.c.bf16 %v837_v41, %v830_v44 }
 0x117   :  { %v851_v57 = vand.u32 4294901760, %v850_v50  ;;  %v839_v60 = vand.u32 4294901760, %v838_v51  ;;  %v688_v51 = vpop.permute.xlu0 %687 }
 0x118   :  { %v844_v61 = vand.u32 4294901760, %v843_v54  ;;  %4483 = vmatprep.subr.bf16.mxu1 %v4482_v53  ;;  %v832_v62 = vand.u32 4294901760, %v831_v55  ;;  %v4498_v3 = vpack.c.bf16 %v850_v50, %v843_v54 }
 0x119   :  { %4485 = vmatpush3.bf16.msra.mxu1 %v4482_v53  ;;  %v852_v5 = vsub.f32 %v850_v50, %v851_v57  ;;  %v693_v50 = vpop.permute.xlu1 %692 }
 0x11a   :  { %v4486_v6 = vpack.c.bf16 %v839_v60, %v832_v62  ;;  %v845_v7 = vsub.f32 %v843_v54, %v844_v61  ;;  %v4514_v8 = vpack.c.bf16 %v851_v57, %v844_v61 }
 0x11b   :  { %v853_v9 = vand.u32 4294901760, %v852_v5  ;;  %v698_v5 = vpop.permute.xlu0 %697 }
 0x11c   :  { %4085 = vmatmul.mubr.f32.vlgmr.msra.gmra.mrb[0].mxu1 %v801_v59  ;;  %4487 = vmatprep.subr.bf16.mxu1 %v4486_v6  ;;  %v846_v12 = vand.u32 4294901760, %v845_v7 }
 0x11d   :  { %4489 = vmatpush3.bf16.msra.mxu1 %v4486_v6  ;;  %4087 = vmatprep.mubr.f32.mxu1 %v811_v4  ;;  %v703_v63 = vpop.permute.xlu1 %702 }
 0x11e   :  { %v4490_v14 = vpack.c.bf16 %v853_v9, %v846_v12 }
 0x120   :  { %4088 = vmatmul.mubr.f32.gmra.mrb[2].mxu1 %v821_v10  ;;  %4491 = vmatprep.subr.bf16.mxu1 %v4490_v14 }
 0x121   :  { %4493 = vmatpush3.bf16.msra.mxu1 %v4490_v14  ;;  %4098 = vmatprep.mubr.f32.mxu1 %v5077_v0 }
 0x122   :  { %4495 = vmatprep.subr.bf16.mxu1 %v4494_v49 }
 0x124   :  { %4099 = vmatmul.mubr.f32.vlgmr.msra.gmra.mrb[0].mxu1 %v5097_v11 }
 0x125   :  { %4497 = vmatpush3.bf16.msra.mxu1 %v4494_v49  ;;  %4101 = vmatprep.mubr.f32.mxu1 %v5099_v13 }
 0x126   :  { %4499 = vmatprep.subr.bf16.mxu1 %v4498_v3 }
 0x128   :  { %4102 = vmatmul.mubr.f32.gmra.mrb[2].mxu1 %v5105_v22 }
 0x129   :  { %4501 = vmatpush3.bf16.msra.mxu1 %v4498_v3  ;;  %4112 = vmatprep.mubr.f32.mxu1 %v5080_v1  ;;  %v1336_v1 = vld [vmem:[%s5397_s5] sm:$0xff] }
 0x12a   :  { %4503 = vmatprep.subr.bf16.mxu1 %v5115_v38 }
 0x12c   :  { %4113 = vmatmul.mubr.f32.vlgmr.msra.gmra.mrb[0].mxu1 %v5103_v20  ;;  %v2000_v20 = vld [vmem:[%s5400_s8 + $0x10] sm:$0xff] }
 0x12d   :  { %4505 = vmatpush3.bf16.msra.mxu1 %v5115_v38  ;;  %4115 = vmatprep.mubr.f32.mxu1 %v5108_v24  ;;  %v2009_v23 = vsel %vm72_vm0, %v2000_v20, 0  ;;  %v2001_v24 = vld [vmem:[%s5400_s8 + $0x18] sm:$0xff] }
 0x12e   :  { %4507 = vmatprep.subr.bf16.mxu1 %v4482_v53  ;;  %v2101_v27 = vand.u32 4294901760, %v2009_v23  ;;  %v2012_v28 = vsel %vm72_vm0, %v2001_v24, 0 }
 0x12f   :  { %v2111_v29 = vand.u32 4294901760, %v2012_v28 }
 0x130   :  { %4116 = vmatmul.mubr.f32.gmra.mrb[2].mxu1 %v5112_v34  ;;  %v2102_v32 = vsub.f32 %v2009_v23, %v2101_v27  ;;  %v2083_v34 = vand.u32 4294901760, %v2082_v30 }
 0x131   :  { %4509 = vmatpush3.bf16.msra.mxu1 %v4482_v53  ;;  %4126 = vmatprep.mubr.f32.mxu1 %v789_v2  ;;  %v1365_v2 = vsel %vm705_vm1, %v1336_v1, 0  ;;  %v2112_v33 = vsub.f32 %v2012_v28, %v2111_v29 }
 0x132   :  { %4511 = vmatprep.subr.bf16.mxu1 %v4510_v56  ;;  %v5160_v16 = vand.u32 4294901760, %v1365_v2  ;;  %v2103_v36 = vand.u32 4294901760, %v2102_v32 }
 0x134   :  { %4127 = vmatmul.mubr.f32.vlgmr.msra.gmra.mrb[0].mxu1 %v799_v31  ;;  %v2104_v40 = vsub.f32 %v2102_v32, %v2103_v36 }
 0x135   :  { %4513 = vmatpush3.bf16.msra.mxu1 %v4510_v56  ;;  %4129 = vmatprep.mubr.f32.mxu1 %v809_v37  ;;  %v2113_v37 = vand.u32 4294901760, %v2112_v33 }
 0x136   :  { %4515 = vmatprep.subr.bf16.mxu1 %v4514_v8  ;;  %v2105_v44 = vand.u32 4294901760, %v2104_v40 }
 0x137   :  { %v2114_v41 = vsub.f32 %v2112_v33, %v2113_v37 }
 0x138   :  { %4130 = vmatmul.mubr.f32.gmra.mrb[2].mxu1 %v819_v48 }
 0x139   :  { %4517 = vmatpush3.bf16.msra.mxu1 %v4514_v8  ;;  %4140 = vmatprep.mubr.f32.mxu1 %v5077_v0  ;;  %v2115_v45 = vand.u32 4294901760, %v2114_v41 }
 0x13a   :  { %4519 = vmatprep.subr.bf16.mxu1 %v5115_v38 }
 0x13c   :  { %4141 = vmatmul.mubr.f32.vlgmr.msra.gmra.mrb[0].mxu1 %v5097_v11 }
 0x13d   :  { %4521 = vmatpush3.bf16.msra.mxu1 %v5115_v38  ;;  %4143 = vmatprep.mubr.f32.mxu1 %v5099_v13  ;;  %v2084_v38 = vsub.f32 %v2082_v30, %v2083_v34 }
 0x13e   :  { %4523 = vmatprep.subr.bf16.mxu1 %v4482_v53 }
 0x13f   :  { %v2085_v42 = vand.u32 4294901760, %v2084_v38 }
 0x140   :  { %4144 = vmatmul.mubr.f32.gmra.mrb[2].mxu1 %v5105_v22 }
 0x141   :  { %4525 = vmatpush3.bf16.msra.mxu1 %v4482_v53  ;;  %4154 = vmatprep.mubr.f32.mxu1 %v5077_v0  ;;  %v5163_v0 = vsub.f32 %v1365_v2, %v5160_v16 }
 0x142   :  { %4575 = vmatprep.subr.bf16.mxu1 %v4937_v15 }
 0x144   :  { %4155 = vmatmul.mubr.f32.vlgmr.msra.gmra.mrb[0].mxu1 %v5097_v11  ;;  %v1447_v11 = vand.u32 4294901760, %v5163_v0 }
 0x145   :  { %4157 = vmatprep.mubr.f32.mxu1 %v5099_v13  ;;  %4577 = vmatpush3.bf16.msra.mxu1 %v4937_v15 }
 0x146   :  { %4579 = vmatprep.subr.bf16.mxu1 %v4998_v46  ;;  %v1448_v13 = vsub.f32 %v5163_v0, %v1447_v11 }
 0x148   :  { %4158 = vmatmul.mubr.f32.gmra.mrb[2].mxu1 %v5105_v22  ;;  %v1449_v17 = vand.u32 4294901760, %v1448_v13  ;;  %v2006_v22 = vsel %vm72_vm0, %v1999_v19, 0 }
 0x149   :  { %v2091_v26 = vand.u32 4294901760, %v2006_v22  ;;  %4248 = vmatprep.mubr.f32.mxu1 %v2085_v42 }
 0x14a   :  { %4168 = vmatprep.mubr.f32.mxu0 %v1449_v17 }
 0x14b   :  { %v2092_v31 = vsub.f32 %v2006_v22, %v2091_v26 }
 0x14d   :  { %v2093_v35 = vand.u32 4294901760, %v2092_v31 }
 0x14f   :  { %v2094_v39 = vsub.f32 %v2092_v31, %v2093_v35 }
 0x151   :  { %v2095_v43 = vand.u32 4294901760, %v2094_v39 }
 0x153   :  { %4249 = vmatmul.mubr.f32.vlgmr.msra.gmra.mrb[4].mxu1 %v2095_v43 }
 0x154   :  { %4581 = vmatpush3.bf16.msra.mxu1 %v4998_v46  ;;  %4251 = vmatprep.mubr.f32.mxu1 %v2105_v44  ;;  %v1337_v46 = vld [vmem:[%s5397_s5 + $0x8] sm:$0xff] }
 0x155   :  { %4583 = vmatprep.subr.bf16.mxu1 %v5002_v47 }
 0x157   :  { %4252 = vmatmul.mubr.f32.gmra.mrb[6].mxu1 %v2115_v45 }
 0x158   :  { %4258 = vmatprep.mubr.f32.mxu1 %v2081_v25 }
 0x15b   :  { %4259 = vmatmul.mubr.f32.vlgmr.msra.gmra.mrb[4].mxu1 %v2091_v26 }
 0x15c   :  { %4585 = vmatpush3.bf16.msra.mxu1 %v5002_v47  ;;  %4261 = vmatprep.mubr.f32.mxu1 %v2101_v27  ;;  %v1338_v47 = vld [vmem:[%s5397_s5 + $0x10] sm:$0xff] }
 0x15d   :  { %4587 = vmatprep.subr.bf16.mxu1 %v4937_v15  ;;  %v1371_v48 = vsel %vm705_vm1, %v1338_v47, 0 }
 0x15e   :  { %v5207_v52 = vand.u32 4294901760, %v1371_v48 }
 0x15f   :  { %4262 = vmatmul.mubr.f32.gmra.mrb[6].mxu1 %v2111_v29 }
 0x160   :  { %4268 = vmatprep.mubr.f32.mxu1 %v2082_v30  ;;  %v5216_v62 = vsub.f32 %v1371_v48, %v5207_v52 }
 0x162   :  { %v1467_v13 = vand.u32 4294901760, %v5216_v62 }
 0x163   :  { %4269 = vmatmul.mubr.f32.vlgmr.msra.gmra.mrb[4].mxu1 %v2092_v31 }
 0x164   :  { %4589 = vmatpush3.bf16.msra.mxu1 %v4937_v15  ;;  %4271 = vmatprep.mubr.f32.mxu1 %v2102_v32 }
 0x165   :  { %4591 = vmatprep.subr.bf16.mxu1 %v5038_v58 }
 0x167   :  { %4272 = vmatmul.mubr.f32.gmra.mrb[6].mxu1 %v2112_v33 }
 0x168   :  { %4278 = vmatprep.mubr.f32.mxu1 %v2083_v34 }
 0x16b   :  { %4279 = vmatmul.mubr.f32.vlgmr.msra.gmra.mrb[4].mxu1 %v2093_v35 }
 0x16c   :  { %4593 = vmatpush3.bf16.msra.mxu1 %v5038_v58  ;;  %4281 = vmatprep.mubr.f32.mxu1 %v2103_v36  ;;  %v1368_v58 = vsel %vm705_vm1, %v1337_v46, 0 }
 0x16d   :  { %4595 = vmatprep.subr.bf16.mxu1 %v4937_v15  ;;  %v5205_v49 = vand.u32 4294901760, %v1368_v58 }
 0x16f   :  { %4282 = vmatmul.mubr.f32.gmra.mrb[6].mxu1 %v2113_v37  ;;  %v5211_v57 = vsub.f32 %v1368_v58, %v5205_v49 }
 0x170   :  { %4288 = vmatprep.mubr.f32.mxu1 %v2081_v25 }
 0x171   :  { %v1457_v9 = vand.u32 4294901760, %v5211_v57 }
 0x173   :  { %4289 = vmatmul.mubr.f32.vlgmr.msra.gmra.mrb[4].mxu1 %v2091_v26  ;;  %v1458_v22 = vsub.f32 %v5211_v57, %v1457_v9 }
 0x174   :  { %4597 = vmatpush3.bf16.msra.mxu1 %v4937_v15  ;;  %4291 = vmatprep.mubr.f32.mxu1 %v2101_v27  ;;  %v1339_v15 = vld [vmem:[%s5397_s5 + $0x18] sm:$0xff] }
 0x175   :  { %v1374_v53 = vsel %vm705_vm1, %v1339_v15, 0  ;;  %v1459_v35 = vand.u32 4294901760, %v1458_v22 }
 0x176   :  { %v5213_v60 = vand.u32 4294901760, %v1374_v53 }
 0x177   :  { %4292 = vmatmul.mubr.f32.gmra.mrb[6].mxu1 %v2111_v29 }
 0x178   :  { %4298 = vmatprep.mubr.f32.mxu1 %v2081_v25  ;;  %v5220_v14 = vsub.f32 %v1374_v53, %v5213_v60  ;;  %v1996_v53 = vld [vmem:[%s5399_s7 + $0x10] sm:$0xff] }
 0x17a   :  { %v1477_v25 = vand.u32 4294901760, %v5220_v14 }
 0x17b   :  { %4299 = vmatmul.mubr.f32.vlgmr.msra.gmra.mrb[4].mxu1 %v2091_v26 }
 0x17c   :  { %4301 = vmatprep.mubr.f32.mxu1 %v2101_v27  ;;  %v1478_v39 = vsub.f32 %v5220_v14, %v1477_v25 }
 0x17e   :  { %v1479_v47 = vand.u32 4294901760, %v1478_v39 }
 0x17f   :  { %4302 = vmatmul.mubr.f32.gmra.mrb[6].mxu1 %v2111_v29  ;;  %v1468_v29 = vsub.f32 %v5216_v62, %v1467_v13 }
 0x181   :  { %v1469_v41 = vand.u32 4294901760, %v1468_v29 }
 0x217   :  { %v4156_v54 = vpop.f32.mrb[0].mxu1 }
 0x218   :  { %v4686_v55 = vadd.f32 %v4156_v54, %v693_v50  ;;  %v1310_v56 = vpop.f32.mrb[1].mxu1 }
 0x219   :  { %v4687_v59 = vadd.f32 %v1310_v56, %v688_v51  ;;  %v1997_v56 = vld [vmem:[%s5399_s7 + $0x18] sm:$0xff] }
 0x21a   :  { %v1333_v61 = vmax.f32 %v4686_v55, 0.0  ;;  %v2609_v55 = vsel %vm705_vm1, %v1996_v53, 0 }
 0x21b   :  { %v1332_v3 = vmax.f32 %v4687_v59, 0.0  ;;  %v4159_v4 = vpop.f32.mrb[2].mxu1  ;;  %v1352_v59 = vpop.permute.xlu1 %1351 }
 0x21c   :  { %v1380_v6 = vand.u32 4294901760, %v1333_v61  ;;  %v4688_v7 = vadd.f32 %v4159_v4, %v703_v63  ;;  %v1322_v8 = vpop.f32.mrb[3].mxu1 }
 0x21d   :  { %v1377_v10 = vand.u32 4294901760, %v1332_v3  ;;  %v4689_v12 = vadd.f32 %v1322_v8, %v698_v5 }
 0x21e   :  { %v1494_v1 = vsub.f32 %v1333_v61, %v1380_v6  ;;  %v1335_v2 = vmax.f32 %v4688_v7, 0.0  ;;  %v5287_v61 = vand.u32 4294901760, %v2609_v55 }
 0x21f   :  { %v5223_v17 = vpack.c.bf16 %v1380_v6, %v1377_v10  ;;  %v1487_v18 = vsub.f32 %v1332_v3, %v1377_v10  ;;  %v1334_v19 = vmax.f32 %v4689_v12, 0.0  ;;  %v1362_v10 = vpop.permute.xlu1 %1361 }
 0x220   :  { %v1495_v20 = vand.u32 4294901760, %v1494_v1  ;;  %v1386_v21 = vand.u32 4294901760, %v1335_v2 }
 0x221   :  { %v1488_v23 = vand.u32 4294901760, %v1487_v18  ;;  %v1383_v24 = vand.u32 4294901760, %v1334_v19  ;;  %4527 = vmatprep.subr.bf16.mxu0 %v5223_v17  ;;  %v4542_v26 = vpack.c.bf16 %v1494_v1, %v1487_v18 }
 0x222   :  { %v1508_v27 = vsub.f32 %v1335_v2, %v1386_v21  ;;  %4529 = vmatpush3.bf16.msra.mxu0 %v5223_v17  ;;  %v1496_v28 = vsub.f32 %v1494_v1, %v1495_v20 }
 0x223   :  { %v4530_v30 = vpack.c.bf16 %v1386_v21, %v1383_v24  ;;  %v1501_v31 = vsub.f32 %v1334_v19, %v1383_v24  ;;  %v1489_v32 = vsub.f32 %v1487_v18, %v1488_v23  ;;  %v4558_v33 = vpack.c.bf16 %v1495_v20, %v1488_v23 }
 0x224   :  { %v1509_v34 = vand.u32 4294901760, %v1508_v27  ;;  %v1497_v36 = vand.u32 4294901760, %v1496_v28 }
 0x225   :  { %v1502_v37 = vand.u32 4294901760, %v1501_v31  ;;  %4531 = vmatprep.subr.bf16.mxu0 %v4530_v30  ;;  %v1490_v38 = vand.u32 4294901760, %v1489_v32  ;;  %v4546_v40 = vpack.c.bf16 %v1508_v27, %v1501_v31 }
 0x226   :  { %4533 = vmatpush3.bf16.msra.mxu0 %v4530_v30  ;;  %v1510_v42 = vsub.f32 %v1508_v27, %v1509_v34 }
 0x227   :  { %v4534_v43 = vpack.c.bf16 %v1497_v36, %v1490_v38  ;;  %v1503_v44 = vsub.f32 %v1501_v31, %v1502_v37  ;;  %v4562_v45 = vpack.c.bf16 %v1509_v34, %v1502_v37 }
 0x228   :  { %v1511_v46 = vand.u32 4294901760, %v1510_v42 }
 0x229   :  { %4169 = vmatmul.mubr.f32.vlgmr.msra.gmra.mrb[4].mxu0 %v1459_v35  ;;  %4535 = vmatprep.subr.bf16.mxu0 %v4534_v43  ;;  %v1504_v58 = vand.u32 4294901760, %v1503_v44 }
 0x22a   :  { %4537 = vmatpush3.bf16.msra.mxu0 %v4534_v43  ;;  %4171 = vmatprep.mubr.f32.mxu0 %v1469_v41 }
 0x22b   :  { %v4538_v48 = vpack.c.bf16 %v1511_v46, %v1504_v58 }
 0x22d   :  { %4172 = vmatmul.mubr.f32.gmra.mrb[6].mxu0 %v1479_v47  ;;  %4539 = vmatprep.subr.bf16.mxu0 %v4538_v48 }
 0x22e   :  { %4541 = vmatpush3.bf16.msra.mxu0 %v4538_v48  ;;  %4182 = vmatprep.mubr.f32.mxu0 %v5160_v16 }
 0x22f   :  { %4543 = vmatprep.subr.bf16.mxu0 %v4542_v26 }
 0x231   :  { %4183 = vmatmul.mubr.f32.vlgmr.msra.gmra.mrb[4].mxu0 %v5205_v49 }
 0x232   :  { %4545 = vmatpush3.bf16.msra.mxu0 %v4542_v26  ;;  %4185 = vmatprep.mubr.f32.mxu0 %v5207_v52 }
 0x233   :  { %4547 = vmatprep.subr.bf16.mxu0 %v4546_v40 }
 0x235   :  { %4186 = vmatmul.mubr.f32.gmra.mrb[6].mxu0 %v5213_v60 }
 0x236   :  { %4549 = vmatpush3.bf16.msra.mxu0 %v4546_v40  ;;  %4196 = vmatprep.mubr.f32.mxu0 %v5163_v0  ;;  %v1994_v0 = vld [vmem:[%s5399_s7] sm:$0xff] }
 0x237   :  { %4551 = vmatprep.subr.bf16.mxu0 %v5223_v17 }
 0x239   :  { %4197 = vmatmul.mubr.f32.vlgmr.msra.gmra.mrb[4].mxu0 %v5211_v57 }
 0x23a   :  { %4553 = vmatpush3.bf16.msra.mxu0 %v5223_v17  ;;  %4199 = vmatprep.mubr.f32.mxu0 %v5216_v62  ;;  %v2612_v62 = vsel %vm705_vm1, %v1997_v56, 0  ;;  %v3260_v56 = vld [vmem:[%s5402_s10] sm:$0xff]  ;;  %s4844_s10 = smov [#allocation2]  }
 0x23b   :  { %4555 = vmatprep.subr.bf16.mxu0 %v4530_v30  ;;  %v5293_v7 = vand.u32 4294901760, %v2612_v62  ;;  %s3762_s26 = sshll.u32 %s4844_s10, 4  ;;  %s3763_s26 = int_to_ptr.vmem [resolvable:$true] %s3762_s26 }
 0x23c   :  { %s4816_s27 = scalar_lea.vmem %s3763_s26, 128  ;;  %p4821_p1 = scmp.lt.s32.totalorder %s3763_s26, %s3763_s26 }
 0x23d   :  { %4200 = vmatmul.mubr.f32.gmra.mrb[6].mxu0 %v5220_v14  ;;  %v5300_v21 = vsub.f32 %v2612_v62, %v5293_v7  ;;  %p4817_p0 = scmp.ne.s32.totalorder %s3763_s26, %s4816_s27  ;;  %p4822_p2 = scmp.lt.s32.totalorder %s4816_s27, %s4816_s27 }
 0x23e   :  { %4557 = vmatpush3.bf16.msra.mxu0 %v4530_v30  ;;  %4210 = vmatprep.mubr.f32.mxu0 %v1447_v11  ;;  %v2603_v11 = vsel %vm705_vm1, %v1994_v0, 0 }
 0x23f   :  { %4559 = vmatprep.subr.bf16.mxu0 %v4558_v33  ;;  %v5265_v15 = vand.u32 4294901760, %v2603_v11  ;;  %p4823_p3 = por %p4822_p2, %p4821_p1 }
 0x241   :  { %4211 = vmatmul.mubr.f32.vlgmr.msra.gmra.mrb[4].mxu0 %v1457_v9  ;;  %v5268_v50 = vsub.f32 %v2603_v11, %v5265_v15  ;;  %v5296_v9 = vsub.f32 %v2609_v55, %v5287_v61  ;;  %p4824_p4 = pnand %p4823_p3, %p4817_p0 }
 0x242   :  { %4561 = vmatpush3.bf16.msra.mxu0 %v4558_v33  ;;  %4213 = vmatprep.mubr.f32.mxu0 %v1467_v13  ;;  %v2715_v33 = vand.u32 4294901760, %v5300_v21 }
 0x243   :  { %4563 = vmatprep.subr.bf16.mxu0 %v4562_v45  ;;  %v2685_v51 = vand.u32 4294901760, %v5268_v50  ;;  %v2705_v24 = vand.u32 4294901760, %v5296_v9 }
 0x244   :  { %v2716_v47 = vsub.f32 %v5300_v21, %v2715_v33 }
 0x245   :  { %4214 = vmatmul.mubr.f32.gmra.mrb[6].mxu0 %v1477_v25  ;;  %v2706_v37 = vsub.f32 %v5296_v9, %v2705_v24 }
 0x246   :  { %4565 = vmatpush3.bf16.msra.mxu0 %v4562_v45  ;;  %4224 = vmatprep.mubr.f32.mxu0 %v5160_v16  ;;  %v2717_v53 = vand.u32 4294901760, %v2716_v47 }
 0x247   :  { %4567 = vmatprep.subr.bf16.mxu0 %v5223_v17  ;;  %v2707_v48 = vand.u32 4294901760, %v2706_v37 }
 0x249   :  { %4225 = vmatmul.mubr.f32.vlgmr.msra.gmra.mrb[4].mxu0 %v5205_v49 }
 0x24a   :  { %4569 = vmatpush3.bf16.msra.mxu0 %v5223_v17  ;;  %4227 = vmatprep.mubr.f32.mxu0 %v5207_v52 }
 0x24b   :  { %4571 = vmatprep.subr.bf16.mxu0 %v4530_v30 }
 0x24d   :  { %4228 = vmatmul.mubr.f32.gmra.mrb[6].mxu0 %v5213_v60 }
 0x24e   :  { %4573 = vmatpush3.bf16.msra.mxu0 %v4530_v30  ;;  %4238 = vmatprep.mubr.f32.mxu0 %v5160_v16  ;;  %v2686_v16 = vsub.f32 %v5268_v50, %v2685_v51 }
 0x251   :  { %4239 = vmatmul.mubr.f32.vlgmr.msra.gmra.mrb[4].mxu0 %v5205_v49  ;;  %v2687_v49 = vand.u32 4294901760, %v2686_v16 }
 0x252   :  { %4241 = vmatprep.mubr.f32.mxu0 %v5207_v52  ;;  %v1995_v52 = vld [vmem:[%s5399_s7 + $0x8] sm:$0xff] }
 0x253   :  { %4312 = vmatprep.mubr.f32.mxu1 %v2687_v49  ;;  %v2606_v54 = vsel %vm705_vm1, %v1995_v52, 0 }
 0x254   :  { %v5285_v57 = vand.u32 4294901760, %v2606_v54 }
 0x255   :  { %4242 = vmatmul.mubr.f32.gmra.mrb[6].mxu0 %v5213_v60  ;;  %v1347_v60 = vpop.permute.xlu0 %1346 }
 0x256   :  { %v5291_v5 = vsub.f32 %v2606_v54, %v5285_v57 }
 0x258   :  { %v2695_v18 = vand.u32 4294901760, %v5291_v5 }
 0x259   :  { %v1357_v1 = vpop.permute.xlu0 %1356 }
 0x25a   :  { %v2696_v30 = vsub.f32 %v5291_v5, %v2695_v18 }
 0x25c   :  { %v2697_v43 = vand.u32 4294901760, %v2696_v30 }
 0x324   :  { %v4240_v63 = vpop.f32.mrb[4].mxu0 }
 0x325   :  { %v4690_v3 = vadd.f32 %v4240_v63, %v1352_v59  ;;  %v1968_v4 = vpop.f32.mrb[5].mxu0 }
 0x326   :  { %v4691_v6 = vadd.f32 %v1968_v4, %v1347_v60  ;;  %v3235_v60 = vpop.permute.xlu0 %3234 }
 0x327   :  { %v1991_v8 = vmax.f32 %v4690_v3, 0.0 }
 0x328   :  { %v1990_v12 = vmax.f32 %v4691_v6, 0.0  ;;  %v4243_v14 = vpop.f32.mrb[6].mxu0 }
 0x329   :  { %v2618_v2 = vand.u32 4294901760, %v1991_v8  ;;  %v4692_v13 = vadd.f32 %v4243_v14, %v1362_v10  ;;  %v1980_v17 = vpop.f32.mrb[7].mxu0 }
 0x32a   :  { %v2615_v19 = vand.u32 4294901760, %v1990_v12  ;;  %v4693_v20 = vadd.f32 %v1980_v17, %v1357_v1 }
 0x32b   :  { %v2732_v22 = vsub.f32 %v1991_v8, %v2618_v2  ;;  %v1993_v23 = vmax.f32 %v4692_v13, 0.0 }
 0x32c   :  { %v5303_v25 = vpack.c.bf16 %v2618_v2, %v2615_v19  ;;  %v2725_v26 = vsub.f32 %v1990_v12, %v2615_v19  ;;  %v1992_v27 = vmax.f32 %v4693_v20, 0.0 }
 0x32d   :  { %v2733_v28 = vand.u32 4294901760, %v2732_v22  ;;  %v2624_v29 = vand.u32 4294901760, %v1993_v23 }
 0x32e   :  { %v2726_v31 = vand.u32 4294901760, %v2725_v26  ;;  %v2621_v32 = vand.u32 4294901760, %v1992_v27  ;;  %4599 = vmatprep.subr.bf16.mxu1 %v5303_v25  ;;  %v4614_v34 = vpack.c.bf16 %v2732_v22, %v2725_v26 }
 0x32f   :  { %v2746_v35 = vsub.f32 %v1993_v23, %v2624_v29  ;;  %4601 = vmatpush3.bf16.msra.mxu1 %v5303_v25  ;;  %v2734_v36 = vsub.f32 %v2732_v22, %v2733_v28 }
 0x330   :  { %v4602_v38 = vpack.c.bf16 %v2624_v29, %v2621_v32  ;;  %v2739_v39 = vsub.f32 %v1992_v27, %v2621_v32  ;;  %v2727_v40 = vsub.f32 %v2725_v26, %v2726_v31  ;;  %v4630_v41 = vpack.c.bf16 %v2733_v28, %v2726_v31 }
 0x331   :  { %v2747_v42 = vand.u32 4294901760, %v2746_v35  ;;  %v2735_v44 = vand.u32 4294901760, %v2734_v36 }
 0x332   :  { %v2740_v45 = vand.u32 4294901760, %v2739_v39  ;;  %4603 = vmatprep.subr.bf16.mxu1 %v4602_v38  ;;  %v2728_v46 = vand.u32 4294901760, %v2727_v40  ;;  %v4618_v58 = vpack.c.bf16 %v2746_v35, %v2739_v39 }
 0x333   :  { %4605 = vmatpush3.bf16.msra.mxu1 %v4602_v38  ;;  %v2748_v0 = vsub.f32 %v2746_v35, %v2747_v42 }
 0x334   :  { %v4606_v11 = vpack.c.bf16 %v2735_v44, %v2728_v46  ;;  %v2741_v16 = vsub.f32 %v2739_v39, %v2740_v45  ;;  %v4634_v49 = vpack.c.bf16 %v2747_v42, %v2740_v45 }
 0x335   :  { %v2749_v52 = vand.u32 4294901760, %v2748_v0 }
 0x336   :  { %4313 = vmatmul.mubr.f32.vlgmr.msra.gmra.mrb[4].mxu1 %v2697_v43  ;;  %4607 = vmatprep.subr.bf16.mxu1 %v4606_v11  ;;  %v2742_v54 = vand.u32 4294901760, %v2741_v16 }
 0x337   :  { %4609 = vmatpush3.bf16.msra.mxu1 %v4606_v11  ;;  %4315 = vmatprep.mubr.f32.mxu1 %v2707_v48 }
 0x338   :  { %v4610_v55 = vpack.c.bf16 %v2749_v52, %v2742_v54 }
 0x33a   :  { %4316 = vmatmul.mubr.f32.gmra.mrb[6].mxu1 %v2717_v53  ;;  %4611 = vmatprep.subr.bf16.mxu1 %v4610_v55 }
 0x33b   :  { %4613 = vmatpush3.bf16.msra.mxu1 %v4610_v55  ;;  %4326 = vmatprep.mubr.f32.mxu1 %v5265_v15 }
 0x33c   :  { %4615 = vmatprep.subr.bf16.mxu1 %v4614_v34 }
 0x33e   :  { %4327 = vmatmul.mubr.f32.vlgmr.msra.gmra.mrb[4].mxu1 %v5285_v57 }
 0x33f   :  { %4617 = vmatpush3.bf16.msra.mxu1 %v4614_v34  ;;  %4329 = vmatprep.mubr.f32.mxu1 %v5287_v61 }
 0x340   :  { %4619 = vmatprep.subr.bf16.mxu1 %v4618_v58 }
 0x342   :  { %4330 = vmatmul.mubr.f32.gmra.mrb[6].mxu1 %v5293_v7 }
 0x343   :  { %4621 = vmatpush3.bf16.msra.mxu1 %v4618_v58  ;;  %4340 = vmatprep.mubr.f32.mxu1 %v5268_v50  ;;  %v4841_v50 = vmov 0.0|0.0  }
 0x344   :  { %4623 = vmatprep.subr.bf16.mxu1 %v5303_v25  ;;  %4646 = vmatprep.subr.bf16.mxu0 %v4841_v50 }
 0x346   :  { %4341 = vmatmul.mubr.f32.vlgmr.msra.gmra.mrb[4].mxu1 %v5291_v5 }
 0x347   :  { %4625 = vmatpush3.bf16.msra.mxu1 %v5303_v25  ;;  %4343 = vmatprep.mubr.f32.mxu1 %v5296_v9  ;;  %v3245_v9 = vpop.permute.xlu0 %3244 }
 0x348   :  { %4627 = vmatprep.subr.bf16.mxu1 %v4602_v38 }
 0x34a   :  { %4344 = vmatmul.mubr.f32.gmra.mrb[6].mxu1 %v5300_v21 }
 0x34b   :  { %4629 = vmatpush3.bf16.msra.mxu1 %v4602_v38  ;;  %4354 = vmatprep.mubr.f32.mxu1 %v2685_v51  ;;  %v4843_v51 = vmov 0.0   ;;  %v3265_v47 = vpop.permute.xlu0 %3264 }
 0x34c   :  { %4631 = vmatprep.subr.bf16.mxu1 %v4630_v41  ;;  %4396 = vmatprep.mubr.msk.f32.mxu0 %vm4842_vm2, %v4843_v51 }
 0x34e   :  { %4355 = vmatmul.mubr.f32.vlgmr.msra.gmra.mrb[4].mxu1 %v2695_v18 }
 0x34f   :  { %4633 = vmatpush3.bf16.msra.mxu1 %v4630_v41  ;;  %4357 = vmatprep.mubr.f32.mxu1 %v2705_v24 }
 0x350   :  { %4635 = vmatprep.subr.bf16.mxu1 %v4634_v49 }
 0x352   :  { %4358 = vmatmul.mubr.f32.gmra.mrb[6].mxu1 %v2715_v33 }
 0x353   :  { %4637 = vmatpush3.bf16.msra.mxu1 %v4634_v49  ;;  %4368 = vmatprep.mubr.f32.mxu1 %v5265_v15 }
 0x354   :  { %4639 = vmatprep.subr.bf16.mxu1 %v5303_v25 }
 0x356   :  { %4369 = vmatmul.mubr.f32.vlgmr.msra.gmra.mrb[4].mxu1 %v5285_v57 }
 0x357   :  { %4641 = vmatpush3.bf16.msra.mxu1 %v5303_v25  ;;  %4371 = vmatprep.mubr.f32.mxu1 %v5287_v61 }
 0x358   :  { %4643 = vmatprep.subr.bf16.mxu1 %v4602_v38 }
 0x35a   :  { %4372 = vmatmul.mubr.f32.gmra.mrb[6].mxu1 %v5293_v7 }
 0x35b   :  { %4645 = vmatpush3.bf16.msra.mxu1 %v4602_v38  ;;  %4382 = vmatprep.mubr.f32.mxu1 %v5265_v15  ;;  %v3268_v15 = vsel %vm705_vm1, %v3260_v56, 0 }
 0x35c   :  { %v5348_v59 = vand.u32 4294901760, %v3268_v15 }
 0x35e   :  { %4383 = vmatmul.mubr.f32.vlgmr.msra.gmra.mrb[4].mxu1 %v5285_v57  ;;  %v3240_v57 = vpop.permute.xlu1 %3239  ;;  %v5351_v3 = vsub.f32 %v3268_v15, %v5348_v59 }
 0x35f   :  { %4385 = vmatprep.mubr.f32.mxu1 %v5287_v61 }
 0x360   :  { %v3341_v1 = vand.u32 4294901760, %v5351_v3 }
 0x362   :  { %4386 = vmatmul.mubr.f32.gmra.mrb[6].mxu1 %v5293_v7  ;;  %v3250_v6 = vpop.permute.xlu1 %3249  ;;  %v3342_v24 = vsub.f32 %v5351_v3, %v3341_v1 }
 0x364   :  { %v3343_v36 = vand.u32 4294901760, %v3342_v24 }
 0x431   :  { %v4384_v61 = vpop.f32.mrb[4].mxu1 }
 0x432   :  { %v3253_v62 = vadd.f32 %v4384_v61, %v3240_v57  ;;  %v3206_v63 = vpop.f32.mrb[5].mxu1 }
 0x433   :  { %v3252_v4 = vadd.f32 %v3235_v60, %v3206_v63 }
 0x434   :  { %v3257_v5 = vmax.f32 %v3253_v62, 0.0 }
 0x435   :  { %v3256_v7 = vmax.f32 %v3252_v4, 0.0  ;;  %v4387_v8 = vpop.f32.mrb[6].mxu1 }
 0x436   :  { %v3274_v10 = vand.u32 4294901760, %v3257_v5  ;;  %v3255_v12 = vadd.f32 %v4387_v8, %v3250_v6  ;;  %v3218_v14 = vpop.f32.mrb[7].mxu1 }
 0x437   :  { %v3271_v2 = vand.u32 4294901760, %v3256_v7  ;;  %v3254_v13 = vadd.f32 %v3245_v9, %v3218_v14 }
 0x438   :  { %v3358_v17 = vsub.f32 %v3257_v5, %v3274_v10  ;;  %v3259_v18 = vmax.f32 %v3255_v12, 0.0 }
 0x439   :  { %v4647_v19 = vpack.c.bf16 %v3274_v10, %v3271_v2  ;;  %v3351_v20 = vsub.f32 %v3256_v7, %v3271_v2  ;;  %v3258_v21 = vmax.f32 %v3254_v13, 0.0 }
 0x43a   :  { %v3359_v22 = vand.u32 4294901760, %v3358_v17  ;;  %v3280_v23 = vand.u32 4294901760, %v3259_v18 }
 0x43b   :  { %v3352_v25 = vand.u32 4294901760, %v3351_v20  ;;  %v3277_v26 = vand.u32 4294901760, %v3258_v21  ;;  %4648 = vmatpush3.bf16.msra.mxu0 %v4647_v19  ;;  %v4659_v27 = vpack.c.bf16 %v3358_v17, %v3351_v20 }
 0x43c   :  { %v3360_v28 = vsub.f32 %v3358_v17, %v3359_v22  ;;  %v3372_v29 = vsub.f32 %v3259_v18, %v3280_v23  ;;  %4649 = vmatprep.subr.bf16.mxu0 %v4841_v50 }
 0x43d   :  { %v3353_v30 = vsub.f32 %v3351_v20, %v3352_v25  ;;  %v4650_v31 = vpack.c.bf16 %v3280_v23, %v3277_v26  ;;  %v3365_v32 = vsub.f32 %v3258_v21, %v3277_v26  ;;  %v4671_v33 = vpack.c.bf16 %v3359_v22, %v3352_v25 }
 0x43e   :  { %v3361_v34 = vand.u32 4294901760, %v3360_v28  ;;  %v3373_v35 = vand.u32 4294901760, %v3372_v29 }
 0x43f   :  { %v3354_v37 = vand.u32 4294901760, %v3353_v30  ;;  %v3366_v38 = vand.u32 4294901760, %v3365_v32  ;;  %4651 = vmatpush3.bf16.msra.mxu0 %v4650_v31  ;;  %v4662_v39 = vpack.c.bf16 %v3372_v29, %v3365_v32 }
 0x440   :  { %v3374_v40 = vsub.f32 %v3372_v29, %v3373_v35  ;;  %4652 = vmatprep.subr.bf16.mxu0 %v4841_v50 }
 0x441   :  { %v3367_v41 = vsub.f32 %v3365_v32, %v3366_v38  ;;  %v4653_v42 = vpack.c.bf16 %v3361_v34, %v3354_v37  ;;  %v4674_v43 = vpack.c.bf16 %v3373_v35, %v3366_v38 }
 0x442   :  { %v3375_v44 = vand.u32 4294901760, %v3374_v40  ;;  %4397 = vmatmul.mubr.f32.vlgmr.msra.gmra.mrb[8].mxu0 %v3343_v36 }
 0x443   :  { %v3368_v45 = vand.u32 4294901760, %v3367_v41  ;;  %4654 = vmatpush3.bf16.msra.mxu0 %v4653_v42  ;;  %4407 = vmatprep.mubr.msk.f32.mxu0 %vm4842_vm2, %v4843_v51 }
 0x444   :  { %4655 = vmatprep.subr.bf16.mxu0 %v4841_v50 }
 0x445   :  { %v4656_v46 = vpack.c.bf16 %v3375_v44, %v3368_v45 }
 0x447   :  { %4657 = vmatpush3.bf16.msra.mxu0 %v4656_v46 }
 0x448   :  { %4658 = vmatprep.subr.bf16.mxu0 %v4841_v50 }
 0x44a   :  { %4408 = vmatmul.mubr.f32.vlgmr.msra.gmra.mrb[8].mxu0 %v5348_v59 }
 0x44b   :  { %4660 = vmatpush3.bf16.msra.mxu0 %v4659_v27  ;;  %4418 = vmatprep.mubr.msk.f32.mxu0 %vm4842_vm2, %v4843_v51 }
 0x44c   :  { %4661 = vmatprep.subr.bf16.mxu0 %v4841_v50 }
 0x44f   :  { %4663 = vmatpush3.bf16.msra.mxu0 %v4662_v39 }
 0x450   :  { %4664 = vmatprep.subr.bf16.mxu0 %v4841_v50 }
 0x452   :  { %4419 = vmatmul.mubr.f32.vlgmr.msra.gmra.mrb[8].mxu0 %v5351_v3 }
 0x453   :  { %4666 = vmatpush3.bf16.msra.mxu0 %v4647_v19  ;;  %4429 = vmatprep.mubr.msk.f32.mxu0 %vm4842_vm2, %v4843_v51 }
 0x454   :  { %4667 = vmatprep.subr.bf16.mxu0 %v4841_v50 }
 0x457   :  { %4669 = vmatpush3.bf16.msra.mxu0 %v4650_v31 }
 0x458   :  { %4670 = vmatprep.subr.bf16.mxu0 %v4841_v50 }
 0x45a   :  { %4430 = vmatmul.mubr.f32.vlgmr.msra.gmra.mrb[8].mxu0 %v3341_v1 }
 0x45b   :  { %4672 = vmatpush3.bf16.msra.mxu0 %v4671_v33  ;;  %4440 = vmatprep.mubr.msk.f32.mxu0 %vm4842_vm2, %v4843_v51 }
 0x45c   :  { %4673 = vmatprep.subr.bf16.mxu0 %v4841_v50 }
 0x45f   :  { %4675 = vmatpush3.bf16.msra.mxu0 %v4674_v43 }
 0x460   :  { %4676 = vmatprep.subr.bf16.mxu0 %v4841_v50 }
 0x462   :  { %4441 = vmatmul.mubr.f32.vlgmr.msra.gmra.mrb[8].mxu0 %v5348_v59 }
 0x463   :  { %4678 = vmatpush3.bf16.msra.mxu0 %v4647_v19  ;;  %4451 = vmatprep.mubr.msk.f32.mxu0 %vm4842_vm2, %v4843_v51 }
 0x464   :  { %4679 = vmatprep.subr.bf16.mxu0 %v4841_v50 }
 0x467   :  { %4681 = vmatpush3.bf16.msra.mxu0 %v4650_v31 }
 0x46a   :  { %4452 = vmatmul.mubr.f32.vlgmr.msra.gmra.mrb[8].mxu0 %v5348_v59 }
 0x53d   :  { %v3751_v58 = vpop.f32.mrb[8].mxu0 }
 0x53e   :  { %v4694_v48 = vadd.f32 %v3751_v58, %v3265_v47  ;;  %v4453_v0 = vpop.f32.mrb[9].mxu0 }
 0x540   :  { %3755 = vst [vmem:[#allocation2] sm:$0xff] %v4694_v48 }
 0x541   :  { %4827 = shalt.err (!%p4824_p4)
}
 0x542   :  { %s4828_s29 = scalar_lea.hbm %s5404_s12, 128 }
 0x543   :  { %p4829_p5 = scmp.ne.s32.totalorder %s5404_s12, %s4828_s29  ;;  %p4832_p6 = scmp.lt.u32.totalorder %s4828_s29, %s5404_s12 }
 0x545   :  { %p4834_p7 = pnand %p4832_p6, %p4829_p5 }
 0x547   :  { %4837 = shalt.err (!%p4834_p7)
}
 0x548   :  { %3765 = dma.vmem_to_hbm [thread:$0]  %s3763_s26, 128, %s5404_s12, [#allocation3]  }
 0x549   :  { %4838 = dma.done.wait [#allocation3], 128  }
 0x54a   :  { %4839 = vsyncadd [#allocation3], 4294967168 }
 0x54b   :  { %3769 = vsyncpa [#allocation3], 1 }

</bundles_post_ra>
